<compile_context>
chip_gen: v7x
topology: tpu7x:2x2x1
jax: 0.10.0
libtpu: 0.0.40
codegen_flags: <defaults>
</compile_context>

<pallas_src>
import functools

import jax
import jax.numpy as jnp
from jax.experimental import pallas as pl
from jax.experimental.pallas import tpu as pltpu

PAD_VALUE = -1.0   # allRank-style padded_value_indicator
_TJ_MAX = 1024     # keep <= 1024 so the (TI, TJ) tiles fit v7x's 32 MiB scoped VMEM
_TB_MAX = 8


def _round_up(x, m):
    return ((x + m - 1) // m) * m


def _pairwise_bce_kernel(pred_ref, lab_ref, out_sum_ref, out_cnt_ref,
                         acc_sum, acc_cnt, p_col, t_col, *, tb, ti, tj):
    i = pl.program_id(1)
    j = pl.program_id(2)
    nj = pl.num_programs(2)

    @pl.when(j == 0)
    def _init():
        # Hoist the lane->sublane relayout of the i-tile out of the j loop:
        # done once per (b, i) block, reused for all NJ j-steps.  Padded "i"
        # labels become -inf so they can never win the pair compare.
        ti0 = pl.multiple_of(i * ti, ti)
        p_blk = pred_ref[:, :, pl.ds(ti0, ti)]            # (TB, 1, TI)
        t_blk = lab_ref[:, :, pl.ds(ti0, ti)]
        p_col[...] = p_blk.reshape(tb, ti, 1)
        t_col[...] = jnp.where(t_blk == PAD_VALUE, -jnp.inf,
                               t_blk).reshape(tb, ti, 1)
        acc_sum[...] = jnp.zeros_like(acc_sum)
        acc_cnt[...] = jnp.zeros_like(acc_cnt)

    tj0 = pl.multiple_of(j * tj, tj)
    p_row = pred_ref[:, :, pl.ds(tj0, tj)]                # (TB, 1, TJ), lane-dense
    t_row = lab_ref[:, :, pl.ds(tj0, tj)]
    # Padded "j" labels become +inf so they can never lose the pair compare.
    t_row_m = jnp.where(t_row == PAD_VALUE, jnp.inf, t_row)

    # Fused pair mask: single (TB, TI, TJ) compare.
    mask = t_col[...] > t_row_m                           # (TB, TI, TJ) bool

    # BCEWithLogits(pred_i - pred_j, 1) == softplus(-(pred_i - pred_j)).
    # Stable softplus with x = pred_j - pred_i (EUP: exp + log1p).
    x = p_row - p_col[...]                                # (TB, TI, TJ)
    sp = jnp.maximum(x, 0.0) + jnp.log1p(jnp.exp(-jnp.abs(x)))

    # Exact-f32 XLU lane reductions, accumulated across the j grid axis.
    acc_sum[...] += jnp.sum(jnp.where(mask, sp, 0.0), axis=-1, keepdims=True)
    acc_cnt[...] += jnp.sum(mask.astype(jnp.float32), axis=-1, keepdims=True)

    @pl.when(j == nj - 1)
    def _finalize():
        # Lane-dense (TB, 1, TI) per-row partials; the tiny cross-row sum and
        # the final divide happen in the JAX wrapper so the b and i grid axes
        # stay "parallel" (megacore / v7x dual TensorCore).
        out_sum_ref[...] = acc_sum[...].reshape(tb, 1, ti)
        out_cnt_ref[...] = acc_cnt[...].reshape(tb, 1, ti)


@jax.jit
def bce_loss(pred_scores, labels):
    """Pallas TPU implementation of BceLoss.forward(pred_scores, labels)."""
    pred = pred_scores.astype(jnp.float32)
    lab = labels.astype(jnp.float32)
    B, L = pred.shape

    # ---- tile selection --------------------------------------------------
    l128 = max(128, _round_up(L, 128))
    tj = l128 if l128 <= _TJ_MAX else _TJ_MAX
    l_pad = _round_up(l128, tj)          # pad up instead of degrading to 128x128
    nj = l_pad // tj

    ti = 256 if (l_pad >= 256 and l_pad % 256 == 0) else 128
    if B == 1 and l_pad // ti == 1 and l_pad >= 256:
        ti = 128                          # v7x: give the 2nd TensorCore work
    ni = l_pad // ti

    # Batch blocking for small slates (otherwise grid-overhead dominated).
    tb = 1
    if l_pad <= 512 and B > 1:
        cap = max(1, (1 << 20) // (l_pad * l_pad))   # <= 4 MiB per f32 (TB,TI,TJ)
        tb = min(B, cap, _TB_MAX)
        # v7x shards the 'parallel' (b, i) axes over 2 TensorCores: keep at
        # least 2 parallel blocks whenever the batch allows it.
        while tb > 1 and ((B + tb - 1) // tb) * ni < 2:
            tb //= 2
    nb = (B + tb - 1) // tb
    b_pad = nb * tb

    # ---- padding (masked out by the padding label) ------------------------
    if l_pad != L:
        pred = jnp.pad(pred, ((0, 0), (0, l_pad - L)))
        lab = jnp.pad(lab, ((0, 0), (0, l_pad - L)), constant_values=PAD_VALUE)
    if b_pad != B:
        pred = jnp.pad(pred, ((0, b_pad - B), (0, 0)))
        lab = jnp.pad(lab, ((0, b_pad - B), (0, 0)), constant_values=PAD_VALUE)

    # Lane-dense (B, 1, L_pad) views; each array is passed exactly once and the
    # full per-batch-block rows stay resident in VMEM across all (i, j) tiles.
    pred3 = pred.reshape(b_pad, 1, l_pad)
    lab3 = lab.reshape(b_pad, 1, l_pad)

    kernel = functools.partial(_pairwise_bce_kernel, tb=tb, ti=ti, tj=tj)

    full_row = pl.BlockSpec((tb, 1, l_pad), lambda bb, i, j: (bb, 0, 0))
    part_row = pl.BlockSpec((tb, 1, ti), lambda bb, i, j: (bb, 0, i))

    out_sum, out_cnt = pl.pallas_call(
        kernel,
        out_shape=(jax.ShapeDtypeStruct((b_pad, 1, l_pad), jnp.float32),
                   jax.ShapeDtypeStruct((b_pad, 1, l_pad), jnp.float32)),
        grid_spec=pltpu.PrefetchScalarGridSpec(
            num_scalar_prefetch=0,
            grid=(nb, ni, nj),
            in_specs=[full_row, full_row],
            out_specs=[part_row, part_row],
            scratch_shapes=[pltpu.VMEM((tb, ti, 1), jnp.float32),   # acc_sum
                            pltpu.VMEM((tb, ti, 1), jnp.float32),   # acc_cnt
                            pltpu.VMEM((tb, ti, 1), jnp.float32),   # p_col
                            pltpu.VMEM((tb, ti, 1), jnp.float32)]), # t_col
        compiler_params=pltpu.CompilerParams(
            dimension_semantics=("parallel", "parallel", "arbitrary"),
            vmem_limit_bytes=32 * 1024 * 1024),
        cost_estimate=pl.CostEstimate(
            flops=10 * b_pad * l_pad * l_pad,
            transcendentals=2 * b_pad * l_pad * l_pad,
            bytes_accessed=4 * 4 * b_pad * l_pad),
    )(pred3, lab3)

    # Tiny final reduce in plain JAX.  0/0 -> NaN when there are no valid
    # pairs, matching torch's mean over an empty tensor.
    return jnp.sum(out_sum) / jnp.sum(out_cnt)


def _pairwise_bce_ref(pred, labels, pad=PAD_VALUE):
    """Plain-JAX reference for verification."""
    t = jnp.where(labels == pad, -jnp.inf, labels)
    pd = pred[:, :, None] - pred[:, None, :]
    td = t[:, :, None] - t[:, None, :]
    mask = jnp.logical_and(td > 0.0, jnp.logical_not(jnp.isinf(td)))
    sp = jax.nn.softplus(-pd)
    return jnp.sum(jnp.where(mask, sp, 0.0)) / jnp.sum(mask)


if __name__ == "__main__":
    key = jax.random.PRNGKey(0)
    k1, k2 = jax.random.split(key)

    B, L = 2, 8  # batch of 2 rows, 8 candidates each
    pred_scores = jax.random.normal(k1, (B, L), dtype=jnp.float32)
    labels = jax.random.randint(k2, (B, L), 0, 4).astype(jnp.float32)
    labels = labels.at[0, 6:].set(PAD_VALUE)   # exercise the padding mask
    labels = labels.at[1, 0].set(3.0)          # guarantee >=1 valid pair
    labels = labels.at[1, 1].set(0.0)

    loss = bce_loss(pred_scores, labels)
    jax.block_until_ready(loss)

    ref = _pairwise_bce_ref(pred_scores, labels)
    assert jnp.allclose(loss, ref, rtol=1e-4, atol=1e-4), (loss, ref)

    print("KERNEL_OK")
</pallas_src>

<mosaic_0001>
module attributes {stable_mosaic.version = 11 : i64} {
  func.func @_pairwise_bce_kernel(%arg0: i32, %arg1: i32, %arg2: i32, %arg3: memref<1x1x128xf32, #tpu.memory_space<vmem>>, %arg4: memref<1x1x128xf32, #tpu.memory_space<vmem>>, %arg5: memref<1x1x128xf32, #tpu.memory_space<vmem>>, %arg6: memref<1x1x128xf32, #tpu.memory_space<vmem>>, %arg7: memref<1x128x1xf32, #tpu.memory_space<vmem>>, %arg8: memref<1x128x1xf32, #tpu.memory_space<vmem>>, %arg9: memref<1x128x1xf32, #tpu.memory_space<vmem>>, %arg10: memref<1x128x1xf32, #tpu.memory_space<vmem>>) attributes {dimension_semantics = [#tpu.dimension_semantics<parallel>, #tpu.dimension_semantics<parallel>, #tpu.dimension_semantics<arbitrary>], iteration_bounds = array<i64: 2, 1, 1>, scalar_prefetch = 0 : i64, scratch_operands = 4 : i64, tpu.core_type = #tpu.core_type<tc>, window_params = [{transform_indices = @transform_0, window_bounds = array<i64: 1, 1, 128>}, {transform_indices = @transform_1, window_bounds = array<i64: 1, 1, 128>}, {transform_indices = @transform_2, window_bounds = array<i64: 1, 1, 128>}, {transform_indices = @transform_3, window_bounds = array<i64: 1, 1, 128>}]} {
    %c0_i32 = arith.constant 0 : i32
    %0 = arith.cmpi eq, %arg2, %c0_i32 : i32
    %1 = arith.extui %0 : i1 to i32
    %c0_i32_0 = arith.constant 0 : i32
    %2 = arith.cmpi ne, %1, %c0_i32_0 : i32
    scf.if %2 {
      %c128_i32_30 = arith.constant 128 : i32
      %46 = arith.muli %arg1, %c128_i32_30 : i32
      %47 = tpu.assume_multiple %46, 128 : i32
      %c0_31 = arith.constant 0 : index
      %c0_32 = arith.constant 0 : index
      %48 = arith.index_cast %47 : i32 to index
      %49 = vector.load %arg3[%c0_31, %c0_32, %48] : memref<1x1x128xf32, #tpu.memory_space<vmem>>, vector<1x1x128xf32>
      %c0_33 = arith.constant 0 : index
      %c0_34 = arith.constant 0 : index
      %50 = arith.index_cast %47 : i32 to index
      %51 = vector.load %arg4[%c0_33, %c0_34, %50] : memref<1x1x128xf32, #tpu.memory_space<vmem>>, vector<1x1x128xf32>
      %52 = vector.shape_cast %49 : vector<1x1x128xf32> to vector<1x128x1xf32>
      %c0_35 = arith.constant 0 : index
      %c0_36 = arith.constant 0 : index
      %c0_37 = arith.constant 0 : index
      %53 = vector.load %arg9[%c0_35, %c0_36, %c0_37] : memref<1x128x1xf32, #tpu.memory_space<vmem>>, vector<1x128x1xf32>
      tpu.vector_store %arg9[%c0_35, %c0_36, %c0_37], %52 {strides = array<i32>} : memref<1x128x1xf32, #tpu.memory_space<vmem>>, vector<1x128x1xf32>,
      %cst_38 = arith.constant -1.000000e+00 : f32
      %54 = vector.broadcast %cst_38 : f32 to vector<1x1x128xf32>
      %55 = arith.cmpf oeq, %51, %54 : vector<1x1x128xf32>
      %cst_39 = arith.constant 0xFF800000 : f32
      %56 = vector.broadcast %cst_39 : f32 to vector<1x1x128xf32>
      %57 = arith.select %55, %56, %51 : vector<1x1x128xi1>, vector<1x1x128xf32>
      %58 = vector.shape_cast %57 : vector<1x1x128xf32> to vector<1x128x1xf32>
      %c0_40 = arith.constant 0 : index
      %c0_41 = arith.constant 0 : index
      %c0_42 = arith.constant 0 : index
      %59 = vector.load %arg10[%c0_40, %c0_41, %c0_42] : memref<1x128x1xf32, #tpu.memory_space<vmem>>, vector<1x128x1xf32>
      tpu.vector_store %arg10[%c0_40, %c0_41, %c0_42], %58 {strides = array<i32>} : memref<1x128x1xf32, #tpu.memory_space<vmem>>, vector<1x128x1xf32>,
      %cst_43 = arith.constant 0.000000e+00 : f32
      %60 = vector.broadcast %cst_43 : f32 to vector<1x128x1xf32>
      %c0_44 = arith.constant 0 : index
      %c0_45 = arith.constant 0 : index
      %c0_46 = arith.constant 0 : index
      %61 = vector.load %arg7[%c0_44, %c0_45, %c0_46] : memref<1x128x1xf32, #tpu.memory_space<vmem>>, vector<1x128x1xf32>
      tpu.vector_store %arg7[%c0_44, %c0_45, %c0_46], %60 {strides = array<i32>} : memref<1x128x1xf32, #tpu.memory_space<vmem>>, vector<1x128x1xf32>,
      %cst_47 = arith.constant 0.000000e+00 : f32
      %62 = vector.broadcast %cst_47 : f32 to vector<1x128x1xf32>
      %c0_48 = arith.constant 0 : index
      %c0_49 = arith.constant 0 : index
      %c0_50 = arith.constant 0 : index
      %63 = vector.load %arg8[%c0_48, %c0_49, %c0_50] : memref<1x128x1xf32, #tpu.memory_space<vmem>>, vector<1x128x1xf32>
      tpu.vector_store %arg8[%c0_48, %c0_49, %c0_50], %62 {strides = array<i32>} : memref<1x128x1xf32, #tpu.memory_space<vmem>>, vector<1x128x1xf32>,
    } else {
    }
    %c128_i32 = arith.constant 128 : i32
    %3 = arith.muli %arg2, %c128_i32 : i32
    %4 = tpu.assume_multiple %3, 128 : i32
    %c0 = arith.constant 0 : index
    %c0_1 = arith.constant 0 : index
    %5 = arith.index_cast %4 : i32 to index
    %6 = vector.load %arg3[%c0, %c0_1, %5] : memref<1x1x128xf32, #tpu.memory_space<vmem>>, vector<1x1x128xf32>
    %c0_2 = arith.constant 0 : index
    %c0_3 = arith.constant 0 : index
    %7 = arith.index_cast %4 : i32 to index
    %8 = vector.load %arg4[%c0_2, %c0_3, %7] : memref<1x1x128xf32, #tpu.memory_space<vmem>>, vector<1x1x128xf32>
    %cst = arith.constant -1.000000e+00 : f32
    %9 = vector.broadcast %cst : f32 to vector<1x1x128xf32>
    %10 = arith.cmpf oeq, %8, %9 : vector<1x1x128xf32>
    %cst_4 = arith.constant 0x7F800000 : f32
    %11 = vector.broadcast %cst_4 : f32 to vector<1x1x128xf32>
    %12 = arith.select %10, %11, %8 : vector<1x1x128xi1>, vector<1x1x128xf32>
    %c0_5 = arith.constant 0 : index
    %c0_6 = arith.constant 0 : index
    %c0_7 = arith.constant 0 : index
    %13 = vector.load %arg10[%c0_5, %c0_6, %c0_7] : memref<1x128x1xf32, #tpu.memory_space<vmem>>, vector<1x128x1xf32>
    %14 = vector.broadcast %13 : vector<1x128x1xf32> to vector<1x128x128xf32>
    %15 = vector.broadcast %12 : vector<1x1x128xf32> to vector<1x128x128xf32>
    %16 = arith.cmpf ogt, %14, %15 : vector<1x128x128xf32>
    %c0_8 = arith.constant 0 : index
    %c0_9 = arith.constant 0 : index
    %c0_10 = arith.constant 0 : index
    %17 = vector.load %arg9[%c0_8, %c0_9, %c0_10] : memref<1x128x1xf32, #tpu.memory_space<vmem>>, vector<1x128x1xf32>
    %18 = vector.broadcast %6 : vector<1x1x128xf32> to vector<1x128x128xf32>
    %19 = vector.broadcast %17 : vector<1x128x1xf32> to vector<1x128x128xf32>
    %20 = arith.subf %18, %19 : vector<1x128x128xf32>
    %cst_11 = arith.constant 0.000000e+00 : f32
    %21 = vector.broadcast %cst_11 : f32 to vector<1x128x128xf32>
    %22 = arith.maximumf %20, %21 : vector<1x128x128xf32>
    %23 = math.absf %20 : vector<1x128x128xf32>
    %cst_12 = arith.constant 0.000000e+00 : f32
    %24 = vector.broadcast %cst_12 : f32 to vector<1x128x128xf32>
    %25 = arith.subf %24, %23 : vector<1x128x128xf32>
    %26 = math.exp %25 : vector<1x128x128xf32>
    %27 = math.log1p %26 : vector<1x128x128xf32>
    %28 = arith.addf %22, %27 : vector<1x128x128xf32>
    %c0_13 = arith.constant 0 : index
    %c0_14 = arith.constant 0 : index
    %c0_15 = arith.constant 0 : index
    %29 = vector.load %arg7[%c0_13, %c0_14, %c0_15] : memref<1x128x1xf32, #tpu.memory_space<vmem>>, vector<1x128x1xf32>
    %cst_16 = arith.constant 0.000000e+00 : f32
    %30 = vector.broadcast %cst_16 : f32 to vector<1x128x128xf32>
    %31 = arith.select %16, %28, %30 : vector<1x128x128xi1>, vector<1x128x128xf32>
    %cst_17 = arith.constant dense<0.000000e+00> : vector<1x128xf32>
    %32 = vector.multi_reduction <add>, %31, %cst_17 [2] : vector<1x128x128xf32> to vector<1x128xf32>
    %33 = vector.shape_cast %32 : vector<1x128xf32> to vector<1x128x1xf32>
    %34 = arith.addf %29, %33 : vector<1x128x1xf32>
    %c0_18 = arith.constant 0 : index
    %c0_19 = arith.constant 0 : index
    %c0_20 = arith.constant 0 : index
    %35 = vector.load %arg7[%c0_18, %c0_19, %c0_20] : memref<1x128x1xf32, #tpu.memory_space<vmem>>, vector<1x128x1xf32>
    tpu.vector_store %arg7[%c0_18, %c0_19, %c0_20], %34 {strides = array<i32>} : memref<1x128x1xf32, #tpu.memory_space<vmem>>, vector<1x128x1xf32>,
    %c0_21 = arith.constant 0 : index
    %c0_22 = arith.constant 0 : index
    %c0_23 = arith.constant 0 : index
    %36 = vector.load %arg8[%c0_21, %c0_22, %c0_23] : memref<1x128x1xf32, #tpu.memory_space<vmem>>, vector<1x128x1xf32>
    %37 = arith.extui %16 : vector<1x128x128xi1> to vector<1x128x128xi32>
    %38 = arith.sitofp %37 : vector<1x128x128xi32> to vector<1x128x128xf32>
    %cst_24 = arith.constant dense<0.000000e+00> : vector<1x128xf32>
    %39 = vector.multi_reduction <add>, %38, %cst_24 [2] : vector<1x128x128xf32> to vector<1x128xf32>
    %40 = vector.shape_cast %39 : vector<1x128xf32> to vector<1x128x1xf32>
    %41 = arith.addf %36, %40 : vector<1x128x1xf32>
    %c0_25 = arith.constant 0 : index
    %c0_26 = arith.constant 0 : index
    %c0_27 = arith.constant 0 : index
    %42 = vector.load %arg8[%c0_25, %c0_26, %c0_27] : memref<1x128x1xf32, #tpu.memory_space<vmem>>, vector<1x128x1xf32>
    tpu.vector_store %arg8[%c0_25, %c0_26, %c0_27], %41 {strides = array<i32>} : memref<1x128x1xf32, #tpu.memory_space<vmem>>, vector<1x128x1xf32>,
    %c0_i32_28 = arith.constant 0 : i32
    %43 = arith.cmpi eq, %arg2, %c0_i32_28 : i32
    %44 = arith.extui %43 : i1 to i32
    %c0_i32_29 = arith.constant 0 : i32
    %45 = arith.cmpi ne, %44, %c0_i32_29 : i32
    scf.if %45 {
      %c0_30 = arith.constant 0 : index
      %c0_31 = arith.constant 0 : index
      %c0_32 = arith.constant 0 : index
      %46 = vector.load %arg7[%c0_30, %c0_31, %c0_32] : memref<1x128x1xf32, #tpu.memory_space<vmem>>, vector<1x128x1xf32>
      %47 = vector.shape_cast %46 : vector<1x128x1xf32> to vector<1x1x128xf32>
      %c0_33 = arith.constant 0 : index
      %c0_34 = arith.constant 0 : index
      %c0_35 = arith.constant 0 : index
      %48 = vector.load %arg5[%c0_33, %c0_34, %c0_35] : memref<1x1x128xf32, #tpu.memory_space<vmem>>, vector<1x1x128xf32>
      tpu.vector_store %arg5[%c0_33, %c0_34, %c0_35], %47 {strides = array<i32>} : memref<1x1x128xf32, #tpu.memory_space<vmem>>, vector<1x1x128xf32>,
      %c0_36 = arith.constant 0 : index
      %c0_37 = arith.constant 0 : index
      %c0_38 = arith.constant 0 : index
      %49 = vector.load %arg8[%c0_36, %c0_37, %c0_38] : memref<1x128x1xf32, #tpu.memory_space<vmem>>, vector<1x128x1xf32>
      %50 = vector.shape_cast %49 : vector<1x128x1xf32> to vector<1x1x128xf32>
      %c0_39 = arith.constant 0 : index
      %c0_40 = arith.constant 0 : index
      %c0_41 = arith.constant 0 : index
      %51 = vector.load %arg6[%c0_39, %c0_40, %c0_41] : memref<1x1x128xf32, #tpu.memory_space<vmem>>, vector<1x1x128xf32>
      tpu.vector_store %arg6[%c0_39, %c0_40, %c0_41], %50 {strides = array<i32>} : memref<1x1x128xf32, #tpu.memory_space<vmem>>, vector<1x1x128xf32>,
    } else {
    }
    return
  }
  func.func @transform_0(%arg0: i32, %arg1: i32, %arg2: i32) -> (i32, i32, i32) {
    %c0_i32 = arith.constant 0 : i32
    %c0_i32_0 = arith.constant 0 : i32
    %c0_i32_1 = arith.constant 0 : i32
    return %arg0, %c0_i32, %c0_i32_0 : i32, i32, i32
  }
  func.func @transform_1(%arg0: i32, %arg1: i32, %arg2: i32) -> (i32, i32, i32) {
    %c0_i32 = arith.constant 0 : i32
    %c0_i32_0 = arith.constant 0 : i32
    %c0_i32_1 = arith.constant 0 : i32
    return %arg0, %c0_i32, %c0_i32_0 : i32, i32, i32
  }
  func.func @transform_2(%arg0: i32, %arg1: i32, %arg2: i32) -> (i32, i32, i32) {
    %c0_i32 = arith.constant 0 : i32
    %c0_i32_0 = arith.constant 0 : i32
    return %arg0, %c0_i32, %arg1 : i32, i32, i32
  }
  func.func @transform_3(%arg0: i32, %arg1: i32, %arg2: i32) -> (i32, i32, i32) {
    %c0_i32 = arith.constant 0 : i32
    %c0_i32_0 = arith.constant 0 : i32
    return %arg0, %c0_i32, %arg1 : i32, i32, i32
  }
}

</mosaic_0001>

<bundles_post_ra>
// kernel: bce_loss.1
= control target key start
LH: loop header
LB: loop body
LE: loop exit
PB: predicated region body
PF: predicated region fallthrough
CT: control target
= control target key end

     0   :  { %s1758_s12 = smov 0   ;;  %s1760_s13 = smov 0   ;;  %s2541_s0 = inlined_call_operand.vmem [shape: f32[2,1,128], index: 0, kind: input, shape index: {}]   ;;  %s2542_s1 = inlined_call_operand.vmem [shape: f32[2,1,128], index: 1, kind: input, shape index: {}]   ;;  %s2543_s2 = inlined_call_operand.vmem [shape: f32[2,1,128], index: 2, kind: output, shape index: {0}]   ;;  %s2544_s3 = inlined_call_operand.vmem [shape: f32[2,1,128], index: 3, kind: output, shape index: {1}]  }
   0x1   :  { %s1762_s14 = smov 0  }
   0x2 LB: > { %s33_s15 = sadd.s32 1, %s1730_s13  ;;  %p1599_p0 = scmp.ge.s32.totalorder %s1734_s14, 1  ;;  %s1734_s14 = sphi %s1762_s14, %s14_s14   ;;  %s1730_s13 = sphi %s1760_s13, %s2629_s13   ;;  %s1726_s12 = sphi %s1758_s12, %s2628_s12  }
   0x3   : > { %p35_p1 = scmp.ge.s32.totalorder %s33_s15, 2  ;;  %p169_p2 = scmp.lt.s32.totalorder %s1734_s14, 3 }
   0x5   : > { %s2631_s15 = smov (%p35_p1, %s33_s15), 0  ;;  %p170_p3 = pnand %p1599_p0, %p169_p2 }
   0x7   : > { %173 = sbr.rel (%p170_p3) target bundleno = 661 (0x295), region = 28 }
   0xe   : > { %p201_p4 = scmp.lt.s32.totalorder %s1726_s12, 1  ;;  %v2545_v0 = vlaneseq  ;;  %v1736_v1 = vmov 0   ;;  %vm2546_vm2 = vcmask 7168   ;;  %v1737_v51 = vmov 0.0  }
   0xf   : > { %1646 = vset.pattern.permute.xlu1 %v1736_v1  ;;  %1647 = vset.pattern.permute.xlu0 %v1736_v1  ;;  %399 = vst.msk [vmem:[#allocation2] sm:$0xff] %vm2546_vm2, %v1737_v51  ;;  %400 = vst.msk [vmem:[#allocation2 + $0x8] sm:$0xff] %vm2546_vm2, %v1737_v51 }
  0x10   : > { %s2633_s12 = smov (!%p201_p4, %s1726_s12), 1  ;;  %v1779_v2 = vshrl.u32 %v2545_v0, 7  ;;  %401 = vst.msk [vmem:[#allocation2 + $0x10] sm:$0xff] %vm2546_vm2, %v1737_v51  ;;  %402 = vst.msk [vmem:[#allocation2 + $0x18] sm:$0xff] %vm2546_vm2, %v1737_v51 }
  0x11   : > { %s203_s18 = scalar_lea.vmem %s2541_s0, %s2633_s12  ;;  %s206_s21 = scalar_lea.vmem %s2542_s1, %s2633_s12  ;;  %403 = vst.msk [vmem:[#allocation2 + $0x20] sm:$0xff] %vm2546_vm2, %v1737_v51  ;;  %404 = vst.msk [vmem:[#allocation2 + $0x28] sm:$0xff] %vm2546_vm2, %v1737_v51 }
  0x12   : > { %2551 = vst [vmem:[#allocation6_spill] sm:$0xff] %v1779_v2  ;;  %v1789_v3 = vld [vmem:[%s203_s18] ss:$0 sm:$0xff]  ;;  %v318_v5 = vsub.s32 0, %v1779_v2  ;;  %405 = vst.msk [vmem:[#allocation2 + $0x30] sm:$0xff] %vm2546_vm2, %v1737_v51  ;;  %s218_s24 = scalar_lea.vmem %s2544_s3, %s2633_s12  ;;  %s212_s27 = scalar_lea.vmem %s2543_s2, %s2633_s12 }
  0x13   : > { %v437_v4 = vld [vmem:[%s206_s21] sm:$0x1]  ;;  %243 = vbcast.lane.b32.xlu1 %v1789_v3, 272  ;;  %235 = vbcast.lane.b32.xlu0 %v1789_v3, 256  ;;  %406 = vst.msk [vmem:[#allocation2 + $0x38] sm:$0xff] %vm2546_vm2, %v1737_v51  ;;  %407 = vst.msk [vmem:[#allocation2 + $0x40] sm:$0xff] %vm2546_vm2, %v1737_v51 }
  0x14   : > { %vm438_vm0 = vcmp.eq.f32.partialorder %v437_v4, -1.0  ;;  %v229_v8 = vld [vmem:[%s206_s21] sm:$0x1]  ;;  %408 = vst.msk [vmem:[#allocation2 + $0x48] sm:$0xff] %vm2546_vm2, %v1737_v51  ;;  %409 = vst.msk [vmem:[#allocation2 + $0x50] sm:$0xff] %vm2546_vm2, %v1737_v51 }
  0x15   : > { %v439_v6 = vsel %vm438_vm0, inf, %v437_v4  ;;  %vm314_vm1 = vcmp.eq.f32.partialorder %v229_v8, -1.0  ;;  %410 = vst.msk [vmem:[#allocation2 + $0x58] sm:$0xff] %vm2546_vm2, %v1737_v51  ;;  %411 = vst.msk [vmem:[#allocation2 + $0x60] sm:$0xff] %vm2546_vm2, %v1737_v51 }
  0x16   : > { %v1794_v7 = vrot.slane %v439_v6, %v318_v5  ;;  %v315_v9 = vsel %vm314_vm1, -inf, %v229_v8  ;;  %412 = vst.msk [vmem:[#allocation2 + $0x68] sm:$0xff] %vm2546_vm2, %v1737_v51  ;;  %413 = vst.msk [vmem:[#allocation2 + $0x70] sm:$0xff] %vm2546_vm2, %v1737_v51 }
  0x17   : > { %247 = vbcast.lane.b32.xlu1 %v1789_v3, 280  ;;  %239 = vbcast.lane.b32.xlu0 %v1789_v3, 264  ;;  %v319_v10 = vrot.slane %v315_v9, %v318_v5  ;;  %414 = vst.msk [vmem:[#allocation2 + $0x78] sm:$0xff] %vm2546_vm2, %v1737_v51  ;;  %415 = vst.msk [vmem:[#allocation3] sm:$0xff] %vm2546_vm2, %v1737_v51 }
  0x18   : > { %416 = vst.msk [vmem:[#allocation3 + $0x8] sm:$0xff] %vm2546_vm2, %v1737_v51  ;;  %417 = vst.msk [vmem:[#allocation3 + $0x10] sm:$0xff] %vm2546_vm2, %v1737_v51 }
  0x19   : > { %418 = vst.msk [vmem:[#allocation3 + $0x18] sm:$0xff] %vm2546_vm2, %v1737_v51  ;;  %419 = vst.msk [vmem:[#allocation3 + $0x20] sm:$0xff] %vm2546_vm2, %v1737_v51 }
  0x1a   : > { %420 = vst.msk [vmem:[#allocation3 + $0x28] sm:$0xff] %vm2546_vm2, %v1737_v51  ;;  %421 = vst.msk [vmem:[#allocation3 + $0x30] sm:$0xff] %vm2546_vm2, %v1737_v51 }
  0x1b   : > { %255 = vbcast.lane.b32.xlu1 %v1789_v3, 296  ;;  %251 = vbcast.lane.b32.xlu0 %v1789_v3, 288  ;;  %422 = vst.msk [vmem:[#allocation3 + $0x38] sm:$0xff] %vm2546_vm2, %v1737_v51  ;;  %423 = vst.msk [vmem:[#allocation3 + $0x40] sm:$0xff] %vm2546_vm2, %v1737_v51 }
  0x1c   : > { %424 = vst.msk [vmem:[#allocation3 + $0x48] sm:$0xff] %vm2546_vm2, %v1737_v51  ;;  %425 = vst.msk [vmem:[#allocation3 + $0x50] sm:$0xff] %vm2546_vm2, %v1737_v51 }
  0x1d   : > { %426 = vst.msk [vmem:[#allocation3 + $0x58] sm:$0xff] %vm2546_vm2, %v1737_v51  ;;  %427 = vst.msk [vmem:[#allocation3 + $0x60] sm:$0xff] %vm2546_vm2, %v1737_v51 }
  0x1e   : > { %428 = vst.msk [vmem:[#allocation3 + $0x68] sm:$0xff] %vm2546_vm2, %v1737_v51  ;;  %429 = vst.msk [vmem:[#allocation3 + $0x70] sm:$0xff] %vm2546_vm2, %v1737_v51 }
  0x1f   : > { %263 = vbcast.lane.b32.xlu1 %v1789_v3, 312  ;;  %259 = vbcast.lane.b32.xlu0 %v1789_v3, 304  ;;  %430 = vst.msk [vmem:[#allocation3 + $0x78] sm:$0xff] %vm2546_vm2, %v1737_v51 }
  0x23   : > { %271 = vbcast.lane.b32.xlu1 %v1789_v3, 328  ;;  %267 = vbcast.lane.b32.xlu0 %v1789_v3, 320 }
  0x27   : > { %279 = vbcast.lane.b32.xlu1 %v1789_v3, 344  ;;  %275 = vbcast.lane.b32.xlu0 %v1789_v3, 336 }
  0x2b   : > { %287 = vbcast.lane.b32.xlu1 %v1789_v3, 360  ;;  %283 = vbcast.lane.b32.xlu0 %v1789_v3, 352 }
  0x2f   : > { %295 = vbcast.lane.b32.xlu1 %v1789_v3, 376  ;;  %291 = vbcast.lane.b32.xlu0 %v1789_v3, 368 }
  0x33   : > { %325 = vbcast.lane.b32.xlu1 %v319_v10, 264  ;;  %321 = vbcast.lane.b32.xlu0 %v319_v10, 256 }
  0x37   : > { %329 = vbcast.lane.b32.xlu0 %v319_v10, 272  ;;  %333 = vbcast.lane.b32.xlu1 %v319_v10, 280 }
  0x3b   : > { %337 = vbcast.lane.b32.xlu0 %v319_v10, 288  ;;  %341 = vbcast.lane.b32.xlu1 %v319_v10, 296 }
  0x3f   : > { %345 = vbcast.lane.b32.xlu0 %v319_v10, 304  ;;  %349 = vbcast.lane.b32.xlu1 %v319_v10, 312 }
  0x43   : > { %353 = vbcast.lane.b32.xlu0 %v319_v10, 320  ;;  %357 = vbcast.lane.b32.xlu1 %v319_v10, 328 }
  0x47   : > { %361 = vbcast.lane.b32.xlu0 %v319_v10, 336  ;;  %365 = vbcast.lane.b32.xlu1 %v319_v10, 344 }
  0x4b   : > { %369 = vbcast.lane.b32.xlu0 %v319_v10, 352  ;;  %373 = vbcast.lane.b32.xlu1 %v319_v10, 360 }
  0x4f   : > { %377 = vbcast.lane.b32.xlu0 %v319_v10, 368  ;;  %381 = vbcast.lane.b32.xlu1 %v319_v10, 376 }
  0x85   : > { %v244_v11 = vpop.permute.xlu1 %243  ;;  %v236_v12 = vpop.permute.xlu0 %235 }
  0x86   : > { %300 = vst.msk [vmem:[#allocation4 + $0x10] sm:$0xff] %vm2546_vm2, %v244_v11  ;;  %298 = vst.msk [vmem:[#allocation4] sm:$0xff] %vm2546_vm2, %v236_v12 }
  0x89   : > { %v248_v13 = vpop.permute.xlu1 %247  ;;  %v240_v14 = vpop.permute.xlu0 %239 }
  0x8a   : > { %301 = vst.msk [vmem:[#allocation4 + $0x18] sm:$0xff] %vm2546_vm2, %v248_v13  ;;  %299 = vst.msk [vmem:[#allocation4 + $0x8] sm:$0xff] %vm2546_vm2, %v240_v14 }
  0x8d   : > { %v256_v15 = vpop.permute.xlu1 %255  ;;  %v252_v16 = vpop.permute.xlu0 %251  ;;  %v558_v17 = vld [vmem:[#allocation4] sm:$0xff]  ;;  %v560_v18 = vld [vmem:[#allocation4 + $0x10] sm:$0xff] }
  0x8e   : > { %303 = vst.msk [vmem:[#allocation4 + $0x28] sm:$0xff] %vm2546_vm2, %v256_v15  ;;  %302 = vst.msk [vmem:[#allocation4 + $0x20] sm:$0xff] %vm2546_vm2, %v252_v16  ;;  %582 = vperm.xlu1 %1646, %v558_v17  }
  0x91   : > { %v264_v19 = vpop.permute.xlu1 %263  ;;  %v260_v20 = vpop.permute.xlu0 %259  ;;  %v559_v21 = vld [vmem:[#allocation4 + $0x8] sm:$0xff]  ;;  %v561_v22 = vld [vmem:[#allocation4 + $0x18] sm:$0xff] }
  0x92   : > { %305 = vst.msk [vmem:[#allocation4 + $0x38] sm:$0xff] %vm2546_vm2, %v264_v19  ;;  %304 = vst.msk [vmem:[#allocation4 + $0x30] sm:$0xff] %vm2546_vm2, %v260_v20  ;;  %592 = vperm.xlu1 %1646, %v560_v18   ;;  %587 = vperm.xlu0 %1647, %v559_v21  }
  0x95   : > { %v272_v23 = vpop.permute.xlu1 %271  ;;  %v268_v24 = vpop.permute.xlu0 %267  ;;  %v562_v25 = vld [vmem:[#allocation4 + $0x20] sm:$0xff]  ;;  %v563_v26 = vld [vmem:[#allocation4 + $0x28] sm:$0xff] }
  0x96   : > { %307 = vst.msk [vmem:[#allocation4 + $0x48] sm:$0xff] %vm2546_vm2, %v272_v23  ;;  %306 = vst.msk [vmem:[#allocation4 + $0x40] sm:$0xff] %vm2546_vm2, %v268_v24  ;;  %597 = vperm.xlu0 %1647, %v561_v22   ;;  %602 = vperm.xlu1 %1646, %v562_v25  }
  0x99   : > { %v280_v27 = vpop.permute.xlu1 %279  ;;  %v276_v28 = vpop.permute.xlu0 %275  ;;  %v564_v29 = vld [vmem:[#allocation4 + $0x30] sm:$0xff]  ;;  %v565_v30 = vld [vmem:[#allocation4 + $0x38] sm:$0xff] }
  0x9a   : > { %309 = vst.msk [vmem:[#allocation4 + $0x58] sm:$0xff] %vm2546_vm2, %v280_v27  ;;  %308 = vst.msk [vmem:[#allocation4 + $0x50] sm:$0xff] %vm2546_vm2, %v276_v28  ;;  %607 = vperm.xlu0 %1647, %v563_v26   ;;  %612 = vperm.xlu1 %1646, %v564_v29  }
  0x9d   : > { %v288_v31 = vpop.permute.xlu1 %287  ;;  %v284_v32 = vpop.permute.xlu0 %283  ;;  %v566_v33 = vld [vmem:[#allocation4 + $0x40] sm:$0xff]  ;;  %v567_v34 = vld [vmem:[#allocation4 + $0x48] sm:$0xff] }
  0x9e   : > { %311 = vst.msk [vmem:[#allocation4 + $0x68] sm:$0xff] %vm2546_vm2, %v288_v31  ;;  %310 = vst.msk [vmem:[#allocation4 + $0x60] sm:$0xff] %vm2546_vm2, %v284_v32  ;;  %617 = vperm.xlu0 %1647, %v565_v30   ;;  %622 = vperm.xlu1 %1646, %v566_v33  }
  0xa1   : > { %v296_v35 = vpop.permute.xlu1 %295  ;;  %v292_v36 = vpop.permute.xlu0 %291  ;;  %v568_v37 = vld [vmem:[#allocation4 + $0x50] sm:$0xff]  ;;  %v569_v38 = vld [vmem:[#allocation4 + $0x58] sm:$0xff] }
  0xa2   : > { %313 = vst.msk [vmem:[#allocation4 + $0x78] sm:$0xff] %vm2546_vm2, %v296_v35  ;;  %312 = vst.msk [vmem:[#allocation4 + $0x70] sm:$0xff] %vm2546_vm2, %v292_v36  ;;  %627 = vperm.xlu0 %1647, %v567_v34   ;;  %632 = vperm.xlu1 %1646, %v568_v37  }
  0xa5   : > { %v326_v39 = vpop.permute.xlu1 %325  ;;  %v322_v40 = vpop.permute.xlu0 %321  ;;  %v570_v41 = vld [vmem:[#allocation4 + $0x60] sm:$0xff]  ;;  %v571_v42 = vld [vmem:[#allocation4 + $0x68] sm:$0xff] }
  0xa6   : > { %384 = vst.msk [vmem:[#allocation5 + $0x8] sm:$0xff] %vm2546_vm2, %v326_v39  ;;  %383 = vst.msk [vmem:[#allocation5] sm:$0xff] %vm2546_vm2, %v322_v40  ;;  %637 = vperm.xlu0 %1647, %v569_v38   ;;  %642 = vperm.xlu1 %1646, %v570_v41  }
  0xa9   : > { %v330_v43 = vpop.permute.xlu0 %329  ;;  %v572_v44 = vld [vmem:[#allocation4 + $0x70] sm:$0xff]  ;;  %v334_v45 = vpop.permute.xlu1 %333  ;;  %v573_v46 = vld [vmem:[#allocation4 + $0x78] sm:$0xff] }
  0xaa   : > { %385 = vst.msk [vmem:[#allocation5 + $0x10] sm:$0xff] %vm2546_vm2, %v330_v43  ;;  %647 = vperm.xlu0 %1647, %v571_v42   ;;  %652 = vperm.xlu1 %1646, %v572_v44   ;;  %386 = vst.msk [vmem:[#allocation5 + $0x18] sm:$0xff] %vm2546_vm2, %v334_v45 }
  0xad   : > { %v338_v47 = vpop.permute.xlu0 %337  ;;  %v441_v48 = vld [vmem:[#allocation5 + $0x8] sm:$0xff]  ;;  %v342_v49 = vpop.permute.xlu1 %341  ;;  %v440_v50 = vld [vmem:[#allocation5] sm:$0xff] }
  0xae   : > { %387 = vst.msk [vmem:[#allocation5 + $0x20] sm:$0xff] %vm2546_vm2, %v338_v47  ;;  %657 = vperm.xlu0 %1647, %v573_v46   ;;  %463 = vperm.xlu1 %1646, %v441_v48   ;;  %388 = vst.msk [vmem:[#allocation5 + $0x28] sm:$0xff] %vm2546_vm2, %v342_v49 }
  0xb1   : > { %v346_v52 = vpop.permute.xlu0 %345  ;;  %v442_v53 = vld [vmem:[#allocation5 + $0x10] sm:$0xff]  ;;  %v350_v54 = vpop.permute.xlu1 %349  ;;  %v443_v55 = vld [vmem:[#allocation5 + $0x18] sm:$0xff] }
  0xb2   : > { %389 = vst.msk [vmem:[#allocation5 + $0x30] sm:$0xff] %vm2546_vm2, %v346_v52  ;;  %458 = vperm.xlu0 %1647, %v440_v50   ;;  %468 = vperm.xlu1 %1646, %v442_v53   ;;  %390 = vst.msk [vmem:[#allocation5 + $0x38] sm:$0xff] %vm2546_vm2, %v350_v54 }
  0xb5   : > { %v354_v56 = vpop.permute.xlu0 %353  ;;  %v444_v57 = vld [vmem:[#allocation5 + $0x20] sm:$0xff]  ;;  %v358_v58 = vpop.permute.xlu1 %357  ;;  %v445_v59 = vld [vmem:[#allocation5 + $0x28] sm:$0xff] }
  0xb6   : > { %391 = vst.msk [vmem:[#allocation5 + $0x40] sm:$0xff] %vm2546_vm2, %v354_v56  ;;  %473 = vperm.xlu0 %1647, %v443_v55   ;;  %478 = vperm.xlu1 %1646, %v444_v57   ;;  %392 = vst.msk [vmem:[#allocation5 + $0x48] sm:$0xff] %vm2546_vm2, %v358_v58 }
  0xb9   : > { %v362_v60 = vpop.permute.xlu0 %361  ;;  %v446_v61 = vld [vmem:[#allocation5 + $0x30] sm:$0xff]  ;;  %v366_v62 = vpop.permute.xlu1 %365  ;;  %v447_v63 = vld [vmem:[#allocation5 + $0x38] sm:$0xff] }
  0xba   : > { %393 = vst.msk [vmem:[#allocation5 + $0x50] sm:$0xff] %vm2546_vm2, %v362_v60  ;;  %483 = vperm.xlu0 %1647, %v445_v59   ;;  %488 = vperm.xlu1 %1646, %v446_v61   ;;  %394 = vst.msk [vmem:[#allocation5 + $0x58] sm:$0xff] %vm2546_vm2, %v366_v62 }
  0xbd   : > { %v370_v1 = vpop.permute.xlu0 %369  ;;  %v448_v4 = vld [vmem:[#allocation5 + $0x40] sm:$0xff]  ;;  %v374_v5 = vpop.permute.xlu1 %373  ;;  %v449_v6 = vld [vmem:[#allocation5 + $0x48] sm:$0xff] }
  0xbe   : > { %395 = vst.msk [vmem:[#allocation5 + $0x60] sm:$0xff] %vm2546_vm2, %v370_v1  ;;  %493 = vperm.xlu0 %1647, %v447_v63   ;;  %498 = vperm.xlu1 %1646, %v448_v4   ;;  %396 = vst.msk [vmem:[#allocation5 + $0x68] sm:$0xff] %vm2546_vm2, %v374_v5 }
  0xc1   : > { %v378_v8 = vpop.permute.xlu0 %377  ;;  %v450_v9 = vld [vmem:[#allocation5 + $0x50] sm:$0xff]  ;;  %v382_v10 = vpop.permute.xlu1 %381  ;;  %v451_v11 = vld [vmem:[#allocation5 + $0x58] sm:$0xff] }
  0xc2   : > { %397 = vst.msk [vmem:[#allocation5 + $0x70] sm:$0xff] %vm2546_vm2, %v378_v8  ;;  %503 = vperm.xlu0 %1647, %v449_v6   ;;  %508 = vperm.xlu1 %1646, %v450_v9   ;;  %398 = vst.msk [vmem:[#allocation5 + $0x78] sm:$0xff] %vm2546_vm2, %v382_v10 }
  0xc5   : > { %v452_v12 = vld [vmem:[#allocation5 + $0x60] sm:$0xff]  ;;  %v453_v13 = vld [vmem:[#allocation5 + $0x68] sm:$0xff] }
  0xc6   : > { %513 = vperm.xlu0 %1647, %v451_v11   ;;  %518 = vperm.xlu1 %1646, %v452_v12  }
  0xc9   : > { %v454_v14 = vld [vmem:[#allocation5 + $0x70] sm:$0xff]  ;;  %v455_v15 = vld [vmem:[#allocation5 + $0x78] sm:$0xff] }
  0xca   : > { %523 = vperm.xlu0 %1647, %v453_v13   ;;  %528 = vperm.xlu1 %1646, %v454_v14  }
  0xce   : > { %533 = vperm.xlu0 %1647, %v455_v15  }
 0x10d   : > { %v583_v16 = vpop.permute.xlu1 %582 }
 0x10e   : > { %v1907_v17 = vsub.f32 %v1789_v3, %v583_v16 }
 0x110   : > { %v692_v18 = vand.u32 2147483647, %v1907_v17  ;;  %v676_v56 = vmax.f32 %v1907_v17, 0.0 }
 0x111   : > { %v593_v19 = vpop.permute.xlu1 %592  ;;  %v588_v20 = vpop.permute.xlu0 %587 }
 0x112   : > { %v708_v21 = vsub.f32 0.0, %v692_v18  ;;  %v1911_v22 = vsub.f32 %v1789_v3, %v588_v20  ;;  %v1915_v27 = vsub.f32 %v1789_v3, %v593_v19 }
 0x114   : > { %v724_v23 = vmul.f32 1.442695, %v708_v21  ;;  %v693_v24 = vand.u32 2147483647, %v1911_v22  ;;  %v694_v34 = vand.u32 2147483647, %v1915_v27 }
 0x115   : > { %v603_v25 = vpop.permute.xlu1 %602  ;;  %v598_v26 = vpop.permute.xlu0 %597  ;;  %v677_v63 = vmax.f32 %v1911_v22, 0.0 }
 0x116   : > { %v709_v28 = vsub.f32 0.0, %v693_v24  ;;  %v1918_v29 = vsub.f32 %v1789_v3, %v603_v25  ;;  %1648 = vpow2.f32 %v724_v23  ;;  %v1921_v31 = vsub.f32 %v1789_v3, %v598_v26 }
 0x117   : > { %v710_v40 = vsub.f32 0.0, %v694_v34 }
 0x118   : > { %v726_v30 = vmul.f32 1.442695, %v709_v28  ;;  %v696_v35 = vand.u32 2147483647, %v1918_v29  ;;  %v695_v36 = vand.u32 2147483647, %v1921_v31 }
 0x119   : > { %v613_v32 = vpop.permute.xlu1 %612  ;;  %v608_v33 = vpop.permute.xlu0 %607  ;;  %v728_v49 = vmul.f32 1.442695, %v710_v40 }
 0x11a   : > { %1650 = vpow2.f32 %v726_v30  ;;  %v1927_v37 = vsub.f32 %v1789_v3, %v608_v33  ;;  %v1930_v41 = vsub.f32 %v1789_v3, %v613_v32  ;;  %v712_v42 = vsub.f32 0.0, %v696_v35 }
 0x11b   : > { %v711_v43 = vsub.f32 0.0, %v695_v36  ;;  %1652 = vpow2.f32 %v728_v49 }
 0x11c   : > { %v697_v44 = vand.u32 2147483647, %v1927_v37  ;;  %v698_v50 = vand.u32 2147483647, %v1930_v41  ;;  %v732_v53 = vmul.f32 1.442695, %v712_v42 }
 0x11d   : > { %v623_v38 = vpop.permute.xlu1 %622  ;;  %v618_v39 = vpop.permute.xlu0 %617  ;;  %v730_v57 = vmul.f32 1.442695, %v711_v43 }
 0x11e   : > { %v1934_v47 = vsub.f32 %v1789_v3, %v623_v38  ;;  %v1940_v52 = vsub.f32 %v1789_v3, %v618_v39  ;;  %v713_v58 = vsub.f32 0.0, %v697_v44  ;;  %v714_v6 = vsub.f32 0.0, %v698_v50 }
 0x11f   : > { %1654 = vpow2.f32 %v732_v53 }
 0x120   : > { %v1936_v48 = vpop.eup %1648  ;;  %v700_v1 = vand.u32 2147483647, %v1934_v47  ;;  %v699_v8 = vand.u32 2147483647, %v1940_v52  ;;  %1656 = vpow2.f32 %v730_v57  ;;  %v734_v13 = vmul.f32 1.442695, %v713_v58 }
 0x121   : > { %v633_v45 = vpop.permute.xlu1 %632  ;;  %v628_v46 = vpop.permute.xlu0 %627  ;;  %v756_v4 = vadd.f32 1.0, %v1936_v48  ;;  %v736_v21 = vmul.f32 1.442695, %v714_v6  ;;  %v759_v25 = vmul.f32 -0.5, %v1936_v48 }
 0x122   : > { %v1943_v54 = vsub.f32 %v1789_v3, %v633_v45  ;;  %v1949_v59 = vsub.f32 %v1789_v3, %v628_v46  ;;  %v716_v20 = vsub.f32 0.0, %v700_v1  ;;  %v715_v24 = vsub.f32 0.0, %v699_v8 }
 0x123   : > { %1658 = vlog2.f32 %v756_v4  ;;  %v760_v44 = vadd.f32 1.0, %v759_v25  ;;  %v762_v45 = vand.u32 2147483647, %v1936_v48 }
 0x124   : > { %v1945_v55 = vpop.eup %1650  ;;  %v702_v9 = vand.u32 2147483647, %v1943_v54  ;;  %v701_v14 = vand.u32 2147483647, %v1949_v59  ;;  %v740_v38 = vmul.f32 1.442695, %v716_v20 }
 0x125   : > { %v643_v60 = vpop.permute.xlu1 %642  ;;  %v638_v61 = vpop.permute.xlu0 %637  ;;  %v765_v11 = vadd.f32 1.0, %v1945_v55  ;;  %v768_v40 = vmul.f32 -0.5, %v1945_v55  ;;  %v738_v42 = vmul.f32 1.442695, %v715_v24  ;;  %vm2039_vm8 = vcmp.lt.f32.partialorder %v762_v45, 0.0004427343 }
 0x126   : > { %v1959_v10 = vsub.f32 %v1789_v3, %v643_v60  ;;  %v718_v26 = vsub.f32 0.0, %v702_v9  ;;  %v1970_v30 = vsub.f32 %v1789_v3, %v638_v61  ;;  %v717_v33 = vsub.f32 0.0, %v701_v14  ;;  %v1990_v53 = vpop.eup %1652 }
 0x127   : > { %1660 = vlog2.f32 %v765_v11  ;;  %v769_v9 = vadd.f32 1.0, %v768_v40  ;;  %v761_v14 = vmul.f32 %v1936_v48, %v760_v44  ;;  %v771_v44 = vand.u32 2147483647, %v1945_v55 }
 0x128   : > { %v704_v28 = vand.u32 2147483647, %v1959_v10  ;;  %1662 = vpow2.f32 %v734_v13  ;;  %v744_v46 = vmul.f32 1.442695, %v718_v26  ;;  %v703_v50 = vand.u32 2147483647, %v1970_v30 }
 0x129   : > { %v653_v15 = vpop.permute.xlu1 %652  ;;  %v648_v16 = vpop.permute.xlu0 %647  ;;  %1664 = vpow2.f32 %v736_v21  ;;  %v742_v58 = vmul.f32 1.442695, %v717_v33  ;;  %vm2067_vm11 = vcmp.lt.f32.partialorder %v771_v44, 0.0004427343 }
 0x12a   : > { %v1974_v34 = vsub.f32 %v1789_v3, %v653_v15  ;;  %v1979_v39 = vsub.f32 %v1789_v3, %v648_v16  ;;  %v720_v49 = vsub.f32 0.0, %v704_v28  ;;  %v2001_v6 = vpop.eup %1654  ;;  %1666 = vpow2.f32 %v740_v38 }
 0x12b   : > { %v2006_v11 = vpop.eup %1656  ;;  %1668 = vpow2.f32 %v738_v42  ;;  %v719_v20 = vsub.f32 0.0, %v703_v50  ;;  %v774_v28 = vadd.f32 1.0, %v1990_v53  ;;  %v798_v57 = vand.u32 2147483647, %v2001_v6 }
 0x12c   : > { %v706_v60 = vand.u32 2147483647, %v1974_v34  ;;  %v705_v8 = vand.u32 2147483647, %v1979_v39  ;;  %1670 = vpow2.f32 %v744_v46  ;;  %v748_v16 = vmul.f32 1.442695, %v720_v49 }
 0x12d   : > { %v1976_v35 = vpop.permute.xlu1 %463  ;;  %v658_v36 = vpop.permute.xlu0 %657  ;;  %1672 = vpow2.f32 %v742_v58  ;;  %v783_v38 = vadd.f32 1.0, %v2006_v11  ;;  %v746_v49 = vmul.f32 1.442695, %v719_v20 }
 0x12e   : > { %vm543_vm3 = vcmp.gt.f32.partialorder %v1976_v35, %v1794_v7  ;;  %v1995_v61 = vsub.f32 %v1789_v3, %v658_v36  ;;  %v1659_v15 = vpop.eup %1658  ;;  %v722_v21 = vsub.f32 0.0, %v706_v60  ;;  %v721_v48 = vsub.f32 0.0, %v705_v8 }
 0x12f   : > { %v1603_v43 = vsel %vm543_vm3, 1.0, %v1737_v51  ;;  %v770_v36 = vmul.f32 %v1945_v55, %v769_v9  ;;  %v758_v46 = vmul.f32 0.6931472, %v1659_v15  ;;  %1674 = vpow2.f32 %v748_v16 }
 0x130   : > { %1063 = vadd.xlane.f32.xlu1 %v1603_v43  ;;  %v707_v24 = vand.u32 2147483647, %v1995_v61  ;;  %v752_v58 = vmul.f32 1.442695, %v722_v21  ;;  %1676 = vlog2.f32 %v774_v28  ;;  %v750_v15 = vmul.f32 1.442695, %v721_v48 }
 0x131   : > { %v1997_v1 = vpop.permute.xlu1 %468  ;;  %v1999_v4 = vpop.permute.xlu0 %458  ;;  %v777_v16 = vmul.f32 -0.5, %v1990_v53  ;;  %1678 = vlog2.f32 %v783_v38  ;;  %v764_v21 = vsel %vm2039_vm8, %v761_v14, %v758_v46  ;;  %vm2180_vm8 = vcmp.lt.f32.partialorder %v798_v57, 0.0004427343 }
 0x132   : > { %vm542_vm4 = vcmp.gt.f32.partialorder %v1999_v4, %v1794_v7  ;;  %vm544_vm5 = vcmp.gt.f32.partialorder %v1997_v1, %v1794_v7  ;;  %v1661_v33 = vpop.eup %1660  ;;  %v723_v60 = vsub.f32 0.0, %v707_v24  ;;  %v792_v24 = vadd.f32 1.0, %v2001_v6 }
 0x133   : > { %v1602_v3 = vsel %vm542_vm4, 1.0, %v1737_v51  ;;  %v2026_v40 = vpop.eup %1662  ;;  %v1604_v42 = vsel %vm544_vm5, 1.0, %v1737_v51  ;;  %1680 = vpow2.f32 %v746_v49  ;;  %v786_v49 = vmul.f32 -0.5, %v2006_v11 }
 0x134   : > { %1061 = vadd.xlane.f32.xlu0 %v1602_v3  ;;  %v767_v3 = vmul.f32 0.6931472, %v1661_v33  ;;  %v2047_v55 = vpop.eup %1664  ;;  %v801_v48 = vadd.f32 1.0, %v2026_v40  ;;  %1682 = vpow2.f32 %v752_v58  ;;  %v754_v14 = vmul.f32 1.442695, %v723_v60 }
 0x135   : > { %v2017_v25 = vpop.permute.xlu1 %478  ;;  %v2019_v26 = vpop.permute.xlu0 %473  ;;  %1684 = vpow2.f32 %v750_v15  ;;  %v900_v44 = vadd.f32 %v764_v21, %v676_v56  ;;  %v778_v58 = vadd.f32 1.0, %v777_v16  ;;  %v810_v56 = vadd.f32 1.0, %v2047_v55 }
 0x136   : > { %vm545_vm6 = vcmp.gt.f32.partialorder %v2019_v26, %v1794_v7  ;;  %vm546_vm7 = vcmp.gt.f32.partialorder %v2017_v25, %v1794_v7  ;;  %v2063_v28 = vpop.eup %1666  ;;  %v773_v46 = vsel %vm2067_vm11, %v770_v36, %v767_v3  ;;  %v780_v3 = vand.u32 2147483647, %v1990_v53 }
 0x137   : > { %v1605_v43 = vsel %vm545_vm6, 1.0, %v1737_v51  ;;  %v1606_v45 = vsel %vm546_vm7, 1.0, %v1737_v51  ;;  %v2072_v38 = vpop.eup %1668  ;;  %1686 = vlog2.f32 %v792_v24  ;;  %v901_v17 = vadd.f32 %v773_v46, %v677_v63 }
 0x138   : > { %1065 = vadd.xlane.f32.xlu0 %v1604_v42  ;;  %1067 = vadd.xlane.f32.xlu1 %v1605_v43  ;;  %v2081_v50 = vpop.eup %1670  ;;  %1688 = vlog2.f32 %v801_v48  ;;  %v787_v21 = vadd.f32 1.0, %v786_v49  ;;  %v795_v24 = vmul.f32 -0.5, %v2001_v6  ;;  %v2116_v22 = vsel %vm542_vm4, %v900_v44, 0.0 }
 0x139   : > { %v2043_v8 = vpop.permute.xlu1 %488  ;;  %v2045_v9 = vpop.permute.xlu0 %483  ;;  %1690 = vpow2.f32 %v754_v14  ;;  %v2119_v63 = vmul.f32 %v1990_v53, %v778_v58  ;;  %v789_v48 = vand.u32 2147483647, %v2006_v11  ;;  %vm2130_vm15 = vcmp.lt.f32.partialorder %v780_v3, 0.0004427343 }
 0x13a   : > { %vm547_vm9 = vcmp.gt.f32.partialorder %v2045_v9, %v1794_v7  ;;  %vm548_vm10 = vcmp.gt.f32.partialorder %v2043_v8, %v1794_v7  ;;  %v2087_v60 = vpop.eup %1672  ;;  %v819_v53 = vadd.f32 1.0, %v2072_v38  ;;  %v2140_v58 = vsel %vm543_vm3, %v901_v17, 0.0 }
 0x13b   : > { %v1607_v20 = vsel %vm547_vm9, 1.0, %v1737_v51  ;;  %v2109_v33 = vpop.eup %1674  ;;  %1692 = vlog2.f32 %v810_v56  ;;  %v788_v0 = vmul.f32 %v2006_v11, %v787_v21  ;;  %v796_v15 = vadd.f32 1.0, %v795_v24 }
 0x13c   : > { %1069 = vadd.xlane.f32.xlu0 %v1606_v45  ;;  %1071 = vadd.xlane.f32.xlu1 %v1607_v20  ;;  %v1608_v45 = vsel %vm548_vm10, 1.0, %v1737_v51  ;;  %v1677_v14 = vpop.eup %1676  ;;  %vm2154_vm3 = vcmp.lt.f32.partialorder %v789_v48, 0.0004427343  ;;  %v807_v56 = vand.u32 2147483647, %v2026_v40  ;;  %1694 = vlog2.f32 %v819_v53 }
 0x13d   : > { %v2074_v42 = vpop.permute.xlu1 %498  ;;  %v2076_v43 = vpop.permute.xlu0 %493  ;;  %v776_v35 = vmul.f32 0.6931472, %v1677_v14  ;;  %v813_v23 = vmul.f32 -0.5, %v2047_v55  ;;  %v837_v32 = vadd.f32 1.0, %v2087_v60  ;;  %v816_v12 = vand.u32 2147483647, %v2047_v55 }
 0x13e   : > { %vm549_vm12 = vcmp.gt.f32.partialorder %v2076_v43, %v1794_v7  ;;  %vm550_vm13 = vcmp.gt.f32.partialorder %v2074_v42, %v1794_v7  ;;  %v1679_v44 = vpop.eup %1678  ;;  %vm2190_vm2 = vcmp.lt.f32.partialorder %v807_v56, 0.0004427343  ;;  %v822_v57 = vmul.f32 -0.5, %v2072_v38 }
 0x13f   : > { %v1609_v36 = vsel %vm549_vm12, 1.0, %v1737_v51  ;;  %v1610_v46 = vsel %vm550_vm13, 1.0, %v1737_v51  ;;  %v785_v24 = vmul.f32 0.6931472, %v1679_v44  ;;  %v797_v44 = vmul.f32 %v2001_v6, %v796_v15 }
 0x140   : > { %1073 = vadd.xlane.f32.xlu0 %v1608_v45  ;;  %1075 = vadd.xlane.f32.xlu1 %v1609_v36  ;;  %v804_v45 = vmul.f32 -0.5, %v2026_v40  ;;  %v814_v56 = vadd.f32 1.0, %v813_v23  ;;  %v846_v17 = vadd.f32 1.0, %v2081_v50  ;;  %v2568_v23 = vmax.f32 %v1921_v31, 0.0 }
 0x141   : > { %v2104_v16 = vpop.permute.xlu1 %508  ;;  %v2106_v20 = vpop.permute.xlu0 %503  ;;  %v825_v31 = vand.u32 2147483647, %v2072_v38  ;;  %v2570_v1 = vmax.f32 %v1927_v37, 0.0  ;;  %v2582_v8 = vmax.f32 %v1949_v59, 0.0 }
 0x142   : > { %vm551_vm14 = vcmp.gt.f32.partialorder %v2106_v20, %v1794_v7  ;;  %vm552_vm0 = vcmp.gt.f32.partialorder %v2104_v16, %v1794_v7  ;;  %v805_v14 = vadd.f32 1.0, %v804_v45  ;;  %v782_v45 = vsel %vm2130_vm15, %v2119_v63, %v776_v35 }
 0x143   : > { %v1611_v49 = vsel %vm551_vm14, 1.0, %v1737_v51  ;;  %v1612_v11 = vsel %vm552_vm0, 1.0, %v1737_v51  ;;  %v791_v63 = vsel %vm2154_vm3, %v788_v0, %v785_v24  ;;  %v815_v53 = vmul.f32 %v2047_v55, %v814_v56 }
 0x144   : > { %1077 = vadd.xlane.f32.xlu0 %v1610_v46  ;;  %1079 = vadd.xlane.f32.xlu1 %v1611_v49  ;;  %v828_v46 = vadd.f32 1.0, %v2063_v28  ;;  %v2150_v49 = vpop.eup %1680  ;;  %v806_v35 = vmul.f32 %v2026_v40, %v805_v14  ;;  %v903_v40 = vadd.f32 %v791_v63, %v2568_v23  ;;  %v823_v14 = vadd.f32 1.0, %v822_v57 }
 0x145   : > { %v2143_v36 = vpop.permute.xlu1 %518  ;;  %v2145_v3 = vpop.permute.xlu0 %513  ;;  %v855_v0 = vadd.f32 1.0, %v2150_v49 }
 0x146   : > { %2558 = vst [vmem:[#allocation7_spill] sm:$0xff] %v2143_v36  ;;  %vm553_vm1 = vcmp.gt.f32.partialorder %v2145_v3, %v1794_v7  ;;  %v2159_v13 = vpop.eup %1682  ;;  %vm2549_vm4 = vcmp.gt.f32.partialorder %v2143_v36, %v1794_v7  ;;  %1696 = vlog2.f32 %v828_v46 }
 0x147   : > { %v1613_v21 = vsel %vm553_vm1, 1.0, %v1737_v51  ;;  %v2169_v48 = vpop.eup %1684  ;;  %v1614_v15 = vsel %vm2549_vm4, 1.0, %v1737_v51  ;;  %1698 = vlog2.f32 %v837_v32  ;;  %vm2212_vm4 = vcmp.lt.f32.partialorder %v816_v12, 0.0004427343 }
 0x148   : > { %1081 = vadd.xlane.f32.xlu0 %v1612_v11  ;;  %1083 = vadd.xlane.f32.xlu1 %v1613_v21  ;;  %v1687_v18 = vpop.eup %1686  ;;  %1700 = vlog2.f32 %v846_v17 }
 0x149   : > { %v2175_v19 = vpop.permute.xlu1 %528  ;;  %v2177_v5 = vpop.permute.xlu0 %523  ;;  %v794_v4 = vmul.f32 0.6931472, %v1687_v18  ;;  %v2567_v18 = vmax.f32 %v1915_v27, 0.0  ;;  %1702 = vlog2.f32 %v855_v0 }
 0x14a   : > { %v1689_v11 = vpop.eup %1688  ;;  %vm555_vm11 = vcmp.gt.f32.partialorder %v2177_v5, %v1794_v7  ;;  %vm556_vm15 = vcmp.gt.f32.partialorder %v2175_v19, %v1794_v7 }
 0x14b   : > { %v2195_v6 = vpop.eup %1690  ;;  %v1615_v46 = vsel %vm555_vm11, 1.0, %v1737_v51  ;;  %v803_v2 = vmul.f32 0.6931472, %v1689_v11  ;;  %v902_v24 = vadd.f32 %v782_v45, %v2567_v18  ;;  %v1616_v12 = vsel %vm556_vm15, 1.0, %v1737_v51 }
 0x14c   : > { %1085 = vadd.xlane.f32.xlu0 %v1614_v15  ;;  %1087 = vadd.xlane.f32.xlu1 %v1615_v46  ;;  %v1693_v32 = vpop.eup %1692  ;;  %v831_v15 = vmul.f32 -0.5, %v2063_v28  ;;  %v800_v27 = vsel %vm2180_vm8, %v797_v44, %v794_v4  ;;  %v834_v45 = vand.u32 2147483647, %v2063_v28  ;;  %v864_v18 = vadd.f32 1.0, %v2109_v33 }
 0x14d   : > { %v2210_v62 = vpop.permute.xlu0 %533  ;;  %v1695_v57 = vpop.eup %1694  ;;  %v809_v46 = vsel %vm2190_vm2, %v806_v35, %v803_v2  ;;  %v812_v63 = vmul.f32 0.6931472, %v1693_v32  ;;  %v934_v17 = vsel %vm544_vm5, %v902_v24, 0.0  ;;  %v935_v44 = vsel %vm545_vm6, %v903_v40, 0.0 }
 0x14e   : > { %vm557_vm3 = vcmp.gt.f32.partialorder %v2210_v62, %v1794_v7  ;;  %v824_v4 = vmul.f32 %v2072_v38, %v823_v14  ;;  %v2569_v2 = vmax.f32 %v1918_v29, 0.0  ;;  %v832_v35 = vadd.f32 1.0, %v831_v15  ;;  %v1018_v62 = vld [vmem:[#allocation3 + $0x28] sm:$0xff] }
 0x14f   : > { %v1617_v11 = vsel %vm557_vm3, 1.0, %v1737_v51  ;;  %v840_v51 = vmul.f32 -0.5, %v2087_v60  ;;  %v843_v32 = vand.u32 2147483647, %v2087_v60  ;;  %1704 = vlog2.f32 %v864_v18 }
 0x150   : > { %1089 = vadd.xlane.f32.xlu0 %v1616_v12  ;;  %1091 = vadd.xlane.f32.xlu1 %v1617_v11  ;;  %v1697_v0 = vpop.eup %1696  ;;  %v904_v21 = vadd.f32 %v800_v27, %v2569_v2  ;;  %v905_v26 = vadd.f32 %v809_v46, %v2570_v1  ;;  %v821_v24 = vmul.f32 0.6931472, %v1695_v57  ;;  %vm2256_vm2 = vcmp.lt.f32.partialorder %v825_v31, 0.0004427343 }
 0x151   : > { %v873_v38 = vadd.f32 1.0, %v2169_v48  ;;  %v1699_v29 = vpop.eup %1698  ;;  %v818_v56 = vsel %vm2212_vm4, %v815_v53, %v812_v63  ;;  %vm2263_vm5 = vcmp.lt.f32.partialorder %v834_v45, 0.0004427343  ;;  %v830_v37 = vmul.f32 0.6931472, %v1697_v0 }
 0x152   : > { %v858_v40 = vmul.f32 -0.5, %v2150_v49  ;;  %v882_v14 = vadd.f32 1.0, %v2159_v13  ;;  %v936_v12 = vsel %vm546_vm7, %v904_v21, 0.0  ;;  %v833_v36 = vmul.f32 %v2063_v28, %v832_v35  ;;  %v1701_v25 = vpop.eup %1700 }
 0x153   : > { %1706 = vlog2.f32 %v873_v38  ;;  %vm2274_vm6 = vcmp.lt.f32.partialorder %v843_v32, 0.0004427343  ;;  %v852_v15 = vand.u32 2147483647, %v2081_v50  ;;  %v937_v27 = vsel %vm547_vm9, %v905_v26, 0.0  ;;  %v1703_v18 = vpop.eup %1702 }
 0x154   : > { %950 = vadd.xlane.f32.xlu0 %v2140_v58  ;;  %948 = vadd.xlane.f32.xlu1 %v2116_v22  ;;  %v841_v58 = vadd.f32 1.0, %v840_v51  ;;  %v849_v22 = vmul.f32 -0.5, %v2081_v50  ;;  %v827_v31 = vsel %vm2256_vm2, %v824_v4, %v821_v24  ;;  %v839_v45 = vmul.f32 0.6931472, %v1699_v29 }
 0x155   : > { %1708 = vlog2.f32 %v882_v14  ;;  %v2577_v28 = vmax.f32 %v1930_v41, 0.0  ;;  %v867_v63 = vmul.f32 -0.5, %v2109_v33  ;;  %v891_v51 = vadd.f32 1.0, %v2195_v6 }
 0x156   : > { %v842_v46 = vmul.f32 %v2087_v60, %v841_v58  ;;  %v836_v9 = vsel %vm2263_vm5, %v833_v36, %v830_v37  ;;  %v876_v53 = vmul.f32 -0.5, %v2169_v48  ;;  %v2578_v4 = vmax.f32 %v1940_v52, 0.0 }
 0x157   : > { %v906_v57 = vadd.f32 %v818_v56, %v2577_v28  ;;  %vm2294_vm7 = vcmp.lt.f32.partialorder %v852_v15, 0.0004427343  ;;  %v861_v60 = vand.u32 2147483647, %v2150_v49  ;;  %1710 = vlog2.f32 %v891_v51 }
 0x158   : > { %952 = vadd.xlane.f32.xlu0 %v934_v17  ;;  %954 = vadd.xlane.f32.xlu1 %v935_v44  ;;  %v850_v17 = vadd.f32 1.0, %v849_v22  ;;  %v859_v44 = vadd.f32 1.0, %v858_v40  ;;  %v907_v0 = vadd.f32 %v827_v31, %v2578_v4  ;;  %v845_v2 = vsel %vm2274_vm6, %v842_v46, %v839_v45 }
 0x159   : > { %v848_v21 = vmul.f32 0.6931472, %v1701_v25  ;;  %v857_v35 = vmul.f32 0.6931472, %v1703_v18  ;;  %v870_v32 = vand.u32 2147483647, %v2109_v33  ;;  %v1705_v1 = vpop.eup %1704  ;;  %v909_v37 = vadd.f32 %v845_v2, %v2582_v8 }
 0x15a   : > { %v938_v52 = vsel %vm548_vm10, %v906_v57, 0.0  ;;  %v2581_v26 = vmax.f32 %v1934_v47, 0.0  ;;  %v868_v55 = vadd.f32 1.0, %v867_v63  ;;  %v885_v38 = vmul.f32 -0.5, %v2159_v13 }
 0x15b   : > { %v851_v29 = vmul.f32 %v2081_v50, %v850_v17  ;;  %v860_v56 = vmul.f32 %v2150_v49, %v859_v44  ;;  %v877_v23 = vadd.f32 1.0, %v876_v53  ;;  %v894_v58 = vmul.f32 -0.5, %v2195_v6 }
 0x15c   : > { %956 = vadd.xlane.f32.xlu0 %v936_v12  ;;  %958 = vadd.xlane.f32.xlu1 %v937_v27  ;;  %v908_v24 = vadd.f32 %v836_v9, %v2581_v26  ;;  %v939_v22 = vsel %vm549_vm12, %v907_v0, 0.0  ;;  %vm2316_vm9 = vcmp.lt.f32.partialorder %v861_v60, 0.0004427343  ;;  %v879_v40 = vand.u32 2147483647, %v2169_v48 }
 0x15d   : > { %v1707_v14 = vpop.eup %1706  ;;  %v854_v50 = vsel %vm2294_vm7, %v851_v29, %v848_v21  ;;  %v863_v49 = vsel %vm2316_vm9, %v860_v56, %v857_v35  ;;  %v866_v43 = vmul.f32 0.6931472, %v1705_v1  ;;  %vm2325_vm10 = vcmp.lt.f32.partialorder %v870_v32, 0.0004427343  ;;  %v2593_v21 = vld [vmem:[#allocation7_spill] sm:$0xff]  ;;  %v1015_v29 = vld [vmem:[#allocation3 + $0x10] sm:$0xff] }
 0x15e   : > { %v940_v59 = vsel %vm550_vm13, %v908_v24, 0.0  ;;  %v869_v36 = vmul.f32 %v2109_v33, %v868_v55  ;;  %v875_v11 = vmul.f32 0.6931472, %v1707_v14  ;;  %v886_v15 = vadd.f32 1.0, %v885_v38  ;;  %v1013_v24 = vld [vmem:[#allocation3] sm:$0xff]  ;;  %v1016_v38 = vld [vmem:[#allocation3 + $0x18] sm:$0xff] }
 0x15f   : > { %v1709_v27 = vpop.eup %1708  ;;  %v878_v31 = vmul.f32 %v2169_v48, %v877_v23  ;;  %v888_v45 = vand.u32 2147483647, %v2159_v13  ;;  %v895_v25 = vadd.f32 1.0, %v894_v58  ;;  %v897_v28 = vand.u32 2147483647, %v2195_v6 }
 0x160   : > { %960 = vadd.xlane.f32.xlu0 %v938_v52  ;;  %962 = vadd.xlane.f32.xlu1 %v939_v22  ;;  %v941_v57 = vsel %vm551_vm14, %v909_v37, 0.0  ;;  %v2587_v46 = vmax.f32 %v1943_v54, 0.0  ;;  %v2588_v63 = vmax.f32 %v1970_v30, 0.0  ;;  %vm2343_vm12 = vcmp.lt.f32.partialorder %v879_v40, 0.0004427343  ;;  %v1017_v22 = vld [vmem:[#allocation3 + $0x20] sm:$0xff] }
 0x161   : > { %v872_v48 = vsel %vm2325_vm10, %v869_v36, %v866_v43  ;;  %v881_v18 = vsel %vm2343_vm12, %v878_v31, %v875_v11  ;;  %v884_v20 = vmul.f32 0.6931472, %v1709_v27  ;;  %v1711_v9 = vpop.eup %1710  ;;  %v688_v54 = vmax.f32 %v1959_v10, 0.0  ;;  %v1022_v11 = vld [vmem:[#allocation3 + $0x48] sm:$0xff]  ;;  %v1021_v31 = vld [vmem:[#allocation3 + $0x40] sm:$0xff] }
 0x162   : > { %v910_v42 = vadd.f32 %v854_v50, %v2587_v46  ;;  %v911_v33 = vadd.f32 %v863_v49, %v2588_v63  ;;  %v689_v17 = vmax.f32 %v1979_v39, 0.0  ;;  %v887_v30 = vmul.f32 %v2159_v13, %v886_v15  ;;  %v1020_v50 = vld [vmem:[#allocation3 + $0x38] sm:$0xff]  ;;  %v1019_v49 = vld [vmem:[#allocation3 + $0x30] sm:$0xff] }
 0x163   : > { %vm2354_vm13 = vcmp.lt.f32.partialorder %v888_v45, 0.0004427343  ;;  %v893_v53 = vmul.f32 0.6931472, %v1711_v9  ;;  %v896_v4 = vmul.f32 %v2195_v6, %v895_v25  ;;  %vm898_vm14 = vcmp.lt.f32.partialorder %v897_v28, 0.0004427343 }
 0x164   : > { %964 = vadd.xlane.f32.xlu0 %v940_v59  ;;  %966 = vadd.xlane.f32.xlu1 %v941_v57  ;;  %v942_v0 = vsel %vm552_vm0, %v910_v42, 0.0  ;;  %v943_v10 = vsel %vm553_vm1, %v911_v33, 0.0  ;;  %v912_v41 = vadd.f32 %v872_v48, %v688_v54  ;;  %v913_v39 = vadd.f32 %v881_v18, %v689_v17  ;;  %v1024_v46 = vld [vmem:[#allocation3 + $0x58] sm:$0xff]  ;;  %v1023_v33 = vld [vmem:[#allocation3 + $0x50] sm:$0xff]  ;;  %v1026_v9 = vld [vmem:[#allocation3 + $0x68] sm:$0xff] }
 0x165   : > { %v890_v13 = vsel %vm2354_vm13, %v887_v30, %v884_v20  ;;  %v899_v60 = vsel %vm898_vm14, %v896_v4, %v893_v53  ;;  %v690_v2 = vmax.f32 %v1974_v34, 0.0  ;;  %v691_v6 = vmax.f32 %v1995_v61, 0.0  ;;  %v1014_v61 = vld [vmem:[#allocation3 + $0x8] sm:$0xff]  ;;  %v1025_v30 = vld [vmem:[#allocation3 + $0x60] sm:$0xff] }
 0x166   : > { %vm2594_vm4 = vcmp.gt.f32.partialorder %v2593_v21, %v1794_v7  ;;  %v945_v3 = vsel %vm555_vm11, %v913_v39, 0.0  ;;  %vm2595_vm0 = vcmask 7168  }
 0x167   : > { %v944_v16 = vsel %vm2594_vm4, %v912_v41, 0.0  ;;  %v914_v35 = vadd.f32 %v890_v13, %v690_v2  ;;  %v915_v32 = vadd.f32 %v899_v60, %v691_v6  ;;  %vm2596_vm1 = vmmov %vm2595_vm0  ;;  %v1027_v13 = vld [vmem:[#allocation3 + $0x70] sm:$0xff] }
 0x168   : > { %968 = vadd.xlane.f32.xlu0 %v942_v0  ;;  %970 = vadd.xlane.f32.xlu1 %v943_v10  ;;  %vm2597_vm8 = vmmov %vm2595_vm0  ;;  %v1028_v10 = vld [vmem:[#allocation3 + $0x78] sm:$0xff] }
 0x169   : > { %v946_v1 = vsel %vm556_vm15, %v914_v35, 0.0  ;;  %v947_v34 = vsel %vm557_vm3, %v915_v32, 0.0  ;;  %vm2598_vm11 = vmmov %vm2595_vm0  ;;  %v917_v32 = vld [vmem:[#allocation2 + $0x8] sm:$0xff] }
 0x16a   : > { %vm2599_vm15 = vmmov %vm2595_vm0 }
 0x16b   : > { %vm2600_vm3 = vmmov %vm2595_vm0 }
 0x16c   : > { %972 = vadd.xlane.f32.xlu0 %v944_v16  ;;  %974 = vadd.xlane.f32.xlu1 %v945_v3  ;;  %vm2601_vm2 = vmmov %vm2595_vm0  ;;  %v916_v16 = vld [vmem:[#allocation2] sm:$0xff] }
 0x16d   : > { %vm2602_vm5 = vmmov %vm2595_vm0 }
 0x16e   : > { %vm2603_vm6 = vmmov %vm2595_vm0 }
 0x16f   : > { %vm2604_vm7 = vmmov %vm2595_vm0 }
 0x170   : > { %976 = vadd.xlane.f32.xlu0 %v946_v1  ;;  %978 = vadd.xlane.f32.xlu1 %v947_v34  ;;  %vm2605_vm9 = vmmov %vm2595_vm0 }
 0x171   : > { %vm2606_vm10 = vmmov %vm2595_vm0 }
 0x172   : > { %vm2607_vm12 = vmmov %vm2595_vm0 }
 0x173   : > { %vm2608_vm13 = vmmov %vm2595_vm0 }
 0x174   : > { %vm2609_vm14 = vmmov %vm2595_vm0 }
 0x175   : > { %vm2610_vm4 = vmmov %vm2595_vm0 }
 0x1bd   : > { %v1064_v52 = vpop.xlane.xlu1 %1063 }
 0x1be   : > { %v1094_v26 = vadd.f32 %v1064_v52, %v1014_v61 }
 0x1c0   : > { %1110 = vst.msk [vmem:[#allocation3 + $0x8] sm:$0xff] %vm2595_vm0, %v1094_v26 }
 0x1c1   : > { %v1062_v5 = vpop.xlane.xlu0 %1061 }
 0x1c2   : > { %v1093_v55 = vadd.f32 %v1062_v5, %v1013_v24  ;;  %v919_v24 = vld [vmem:[#allocation2 + $0x18] sm:$0xff]  ;;  %v918_v5 = vld [vmem:[#allocation2 + $0x10] sm:$0xff] }
 0x1c4   : > { %1109 = vst.msk [vmem:[#allocation3] sm:$0xff] %vm2596_vm1, %v1093_v55  ;;  %vm2611_vm1 = vmmov %vm2595_vm0 }
 0x1c5   : > { %v1068_v19 = vpop.xlane.xlu1 %1067  ;;  %v1066_v56 = vpop.xlane.xlu0 %1065 }
 0x1c6   : > { %v1096_v23 = vadd.f32 %v1068_v19, %v1016_v38  ;;  %v1095_v58 = vadd.f32 %v1066_v56, %v1015_v29 }
 0x1c7   : > { %v1322_v7 = vld [vmem:[#allocation3 + $0x8] sm:$0xff] }
 0x1c8   : > { %1112 = vst.msk [vmem:[#allocation3 + $0x18] sm:$0xff] %vm2597_vm8, %v1096_v23  ;;  %1357 = vperm.xlu0 %1647, %v1322_v7   ;;  %v921_v23 = vld [vmem:[#allocation2 + $0x28] sm:$0xff]  ;;  %vm2612_vm8 = vmmov %vm2595_vm0 }
 0x1c9   : > { %1111 = vst.msk [vmem:[#allocation3 + $0x10] sm:$0xff] %vm2598_vm11, %v1095_v58  ;;  %v1072_v8 = vpop.xlane.xlu1 %1071  ;;  %v1070_v37 = vpop.xlane.xlu0 %1069  ;;  %v920_v58 = vld [vmem:[#allocation2 + $0x20] sm:$0xff]  ;;  %vm2613_vm11 = vmmov %vm2595_vm0 }
 0x1ca   : > { %v1098_v47 = vadd.f32 %v1072_v8, %v1018_v62  ;;  %v1097_v40 = vadd.f32 %v1070_v37, %v1017_v22  ;;  %v923_v37 = vld [vmem:[#allocation2 + $0x38] sm:$0xff] }
 0x1cb   : > { %v1321_v14 = vld [vmem:[#allocation3] sm:$0xff] }
 0x1cc   : > { %1114 = vst.msk [vmem:[#allocation3 + $0x28] sm:$0xff] %vm2599_vm15, %v1098_v47  ;;  %1354 = vperm.xlu1 %1646, %v1321_v14   ;;  %v922_v14 = vld [vmem:[#allocation2 + $0x30] sm:$0xff]  ;;  %vm2614_vm15 = vmmov %vm2595_vm0 }
 0x1cd   : > { %1113 = vst.msk [vmem:[#allocation3 + $0x20] sm:$0xff] %vm2600_vm3, %v1097_v40  ;;  %v1076_v43 = vpop.xlane.xlu1 %1075  ;;  %v1074_v12 = vpop.xlane.xlu0 %1073  ;;  %vm2615_vm3 = vmmov %vm2595_vm0 }
 0x1ce   : > { %v1100_v59 = vadd.f32 %v1076_v43, %v1020_v50  ;;  %v1099_v36 = vadd.f32 %v1074_v12, %v1019_v49 }
 0x1cf   : > { %v1324_v15 = vld [vmem:[#allocation3 + $0x18] sm:$0xff] }
 0x1d0   : > { %v1323_v27 = vld [vmem:[#allocation3 + $0x10] sm:$0xff]  ;;  %1116 = vst.msk [vmem:[#allocation3 + $0x38] sm:$0xff] %vm2601_vm2, %v1100_v59  ;;  %1363 = vperm.xlu0 %1647, %v1324_v15   ;;  %v925_v59 = vld [vmem:[#allocation2 + $0x48] sm:$0xff]  ;;  %v924_v15 = vld [vmem:[#allocation2 + $0x40] sm:$0xff] }
 0x1d1   : > { %1115 = vst.msk [vmem:[#allocation3 + $0x30] sm:$0xff] %vm2602_vm5, %v1099_v36  ;;  %1360 = vperm.xlu1 %1646, %v1323_v27   ;;  %v1080_v45 = vpop.xlane.xlu1 %1079  ;;  %v1078_v25 = vpop.xlane.xlu0 %1077  ;;  %vm2616_vm2 = vmmov %vm2595_vm0 }
 0x1d2   : > { %v1102_v28 = vadd.f32 %v1080_v45, %v1022_v11  ;;  %v1101_v57 = vadd.f32 %v1078_v25, %v1021_v31  ;;  %vm2617_vm5 = vmmov %vm2595_vm0 }
 0x1d3   : > { %v1326_v42 = vld [vmem:[#allocation3 + $0x28] sm:$0xff] }
 0x1d4   : > { %v1325_v63 = vld [vmem:[#allocation3 + $0x20] sm:$0xff]  ;;  %1118 = vst.msk [vmem:[#allocation3 + $0x48] sm:$0xff] %vm2603_vm6, %v1102_v28  ;;  %1369 = vperm.xlu0 %1647, %v1326_v42   ;;  %v927_v28 = vld [vmem:[#allocation2 + $0x58] sm:$0xff]  ;;  %v926_v42 = vld [vmem:[#allocation2 + $0x50] sm:$0xff] }
 0x1d5   : > { %1117 = vst.msk [vmem:[#allocation3 + $0x40] sm:$0xff] %vm2604_vm7, %v1101_v57  ;;  %1366 = vperm.xlu1 %1646, %v1325_v63   ;;  %v1084_v51 = vpop.xlane.xlu1 %1083  ;;  %v1082_v48 = vpop.xlane.xlu0 %1081  ;;  %vm2618_vm6 = vmmov %vm2595_vm0 }
 0x1d6   : > { %v1104_v18 = vadd.f32 %v1084_v51, %v1024_v46  ;;  %v1103_v20 = vadd.f32 %v1082_v48, %v1023_v33  ;;  %vm2619_vm7 = vmmov %vm2595_vm0 }
 0x1d7   : > { %v1328_v54 = vld [vmem:[#allocation3 + $0x38] sm:$0xff] }
 0x1d8   : > { %v1327_v17 = vld [vmem:[#allocation3 + $0x30] sm:$0xff]  ;;  %1120 = vst.msk [vmem:[#allocation3 + $0x58] sm:$0xff] %vm2605_vm9, %v1104_v18  ;;  %1375 = vperm.xlu0 %1647, %v1328_v54   ;;  %v929_v18 = vld [vmem:[#allocation2 + $0x68] sm:$0xff]  ;;  %v928_v54 = vld [vmem:[#allocation2 + $0x60] sm:$0xff] }
 0x1d9   : > { %1119 = vst.msk [vmem:[#allocation3 + $0x50] sm:$0xff] %vm2606_vm10, %v1103_v20  ;;  %1372 = vperm.xlu1 %1646, %v1327_v17   ;;  %v1088_v44 = vpop.xlane.xlu1 %1087  ;;  %v1086_v53 = vpop.xlane.xlu0 %1085  ;;  %vm2620_vm9 = vmmov %vm2595_vm0 }
 0x1da   : > { %v1106_v4 = vadd.f32 %v1088_v44, %v1026_v9  ;;  %v1105_v0 = vadd.f32 %v1086_v53, %v1025_v30  ;;  %vm2621_vm10 = vmmov %vm2595_vm0 }
 0x1db   : > { %v1330_v41 = vld [vmem:[#allocation3 + $0x48] sm:$0xff] }
 0x1dc   : > { %v1329_v39 = vld [vmem:[#allocation3 + $0x40] sm:$0xff]  ;;  %1122 = vst.msk [vmem:[#allocation3 + $0x68] sm:$0xff] %vm2607_vm12, %v1106_v4  ;;  %1381 = vperm.xlu0 %1647, %v1330_v41   ;;  %v931_v4 = vld [vmem:[#allocation2 + $0x78] sm:$0xff]  ;;  %v930_v41 = vld [vmem:[#allocation2 + $0x70] sm:$0xff] }
 0x1dd   : > { %1121 = vst.msk [vmem:[#allocation3 + $0x60] sm:$0xff] %vm2608_vm13, %v1105_v0  ;;  %1378 = vperm.xlu1 %1646, %v1329_v39   ;;  %v1092_v60 = vpop.xlane.xlu1 %1091  ;;  %v1090_v2 = vpop.xlane.xlu0 %1089  ;;  %vm2622_vm12 = vmmov %vm2595_vm0 }
 0x1de   : > { %v1108_v6 = vadd.f32 %v1092_v60, %v1028_v10  ;;  %v1107_v21 = vadd.f32 %v1090_v2, %v1027_v13  ;;  %vm2623_vm13 = vmmov %vm2595_vm0 }
 0x1df   : > { %v1332_v3 = vld [vmem:[#allocation3 + $0x58] sm:$0xff] }
 0x1e0   : > { %v1331_v35 = vld [vmem:[#allocation3 + $0x50] sm:$0xff]  ;;  %1124 = vst.msk [vmem:[#allocation3 + $0x78] sm:$0xff] %vm2609_vm14, %v1108_v6  ;;  %1387 = vperm.xlu0 %1647, %v1332_v3   ;;  %vm2624_vm14 = vmmov %vm2595_vm0 }
 0x1e1   : > { %1123 = vst.msk [vmem:[#allocation3 + $0x70] sm:$0xff] %vm2610_vm4, %v1107_v21  ;;  %1384 = vperm.xlu1 %1646, %v1331_v35   ;;  %v949_v1 = vpop.xlane.xlu1 %948  ;;  %v951_v34 = vpop.xlane.xlu0 %950  ;;  %vm2625_vm4 = vmmov %vm2595_vm0 }
 0x1e2   : > { %v980_v61 = vadd.f32 %v949_v1, %v916_v16  ;;  %v981_v52 = vadd.f32 %v951_v34, %v917_v32 }
 0x1e3   : > { %v1334_v56 = vld [vmem:[#allocation3 + $0x68] sm:$0xff] }
 0x1e4   : > { %v1333_v26 = vld [vmem:[#allocation3 + $0x60] sm:$0xff]  ;;  %997 = vst.msk [vmem:[#allocation2] sm:$0xff] %vm2595_vm0, %v980_v61  ;;  %vm1219_vm0 = vcmask 130112  }
 0x1e5   : > { %998 = vst.msk [vmem:[#allocation2 + $0x8] sm:$0xff] %vm2611_vm1, %v981_v52  ;;  %1390 = vperm.xlu0 %1647, %v1333_v26   ;;  %v955_v55 = vpop.xlane.xlu1 %954  ;;  %v953_v38 = vpop.xlane.xlu0 %952  ;;  %vm1226_vm1 = vcmask 195712  }
 0x1e6   : > { %v983_v29 = vadd.f32 %v955_v55, %v919_v24  ;;  %v982_v19 = vadd.f32 %v953_v38, %v918_v5 }
 0x1e7   : > { %v1336_v35 = vld [vmem:[#allocation3 + $0x78] sm:$0xff] }
 0x1e8   : > { %1000 = vst.msk [vmem:[#allocation2 + $0x18] sm:$0xff] %vm2612_vm8, %v983_v29  ;;  %v1335_v47 = vld [vmem:[#allocation3 + $0x70] sm:$0xff]  ;;  %vm1233_vm8 = vcmask 261312  }
 0x1e9   : > { %999 = vst.msk [vmem:[#allocation2 + $0x10] sm:$0xff] %vm2613_vm11, %v982_v19  ;;  %1393 = vperm.xlu0 %1647, %v1334_v56   ;;  %v959_v7 = vpop.xlane.xlu1 %958  ;;  %v957_v62 = vpop.xlane.xlu0 %956  ;;  %vm1240_vm11 = vcmask 326912  }
 0x1ea   : > { %v985_v22 = vadd.f32 %v959_v7, %v921_v23  ;;  %v984_v8 = vadd.f32 %v957_v62, %v920_v58  ;;  %v2626_v7 = vlaneseq }
 0x1eb   : > { %v1128_v36 = vld [vmem:[#allocation2] sm:$0xff] }
 0x1ec   : > { %v1129_v40 = vld [vmem:[#allocation2 + $0x8] sm:$0xff]  ;;  %1002 = vst.msk [vmem:[#allocation2 + $0x28] sm:$0xff] %vm2614_vm15, %v985_v22  ;;  %v2428_v62 = vand.u32 127, %v2626_v7  ;;  %vm1247_vm15 = vcmask 392512  }
 0x1ed   : > { %1001 = vst.msk [vmem:[#allocation2 + $0x20] sm:$0xff] %vm2615_vm3, %v984_v8  ;;  %1396 = vperm.xlu0 %1647, %v1335_v47   ;;  %1164 = vperm.xlu1 %1646, %v1129_v40   ;;  %v963_v50 = vpop.xlane.xlu1 %962  ;;  %v961_v49 = vpop.xlane.xlu0 %960  ;;  %v2627_v40 = vld [vmem:[#allocation6_spill] sm:$0xff]  ;;  %vm1254_vm3 = vcmask 458112  }
 0x1ee   : > { %v987_v43 = vadd.f32 %v963_v50, %v923_v37  ;;  %v986_v12 = vadd.f32 %v961_v49, %v922_v14  ;;  %v1221_v22 = vadd.s32 4294967280, %v2428_v62  ;;  %v1214_v47 = vadd.s32 4294967288, %v2428_v62 }
 0x1ef   : > { %v1131_v57 = vld [vmem:[#allocation2 + $0x18] sm:$0xff]  ;;  %v1212_v14 = vsub.s32 %v2428_v62, %v2627_v40  ;;  %v1228_v50 = vadd.s32 4294967272, %v2428_v62 }
 0x1f0   : > { %v1130_v11 = vld [vmem:[#allocation2 + $0x10] sm:$0xff]  ;;  %1004 = vst.msk [vmem:[#allocation2 + $0x38] sm:$0xff] %vm2616_vm2, %v987_v43  ;;  %v1224_v49 = vsub.s32 %v1221_v22, %v2627_v40  ;;  %v1235_v43 = vadd.s32 4294967264, %v2428_v62  ;;  %vm1261_vm2 = vcmask 523712   ;;  %v1298_v22 = vadd.s32 4294967192, %v2428_v62 }
 0x1f1   : > { %1003 = vst.msk [vmem:[#allocation2 + $0x30] sm:$0xff] %vm2617_vm5, %v986_v12  ;;  %1161 = vperm.xlu0 %1647, %v1128_v36   ;;  %1167 = vperm.xlu1 %1646, %v1130_v11   ;;  %v967_v27 = vpop.xlane.xlu1 %966  ;;  %v965_v31 = vpop.xlane.xlu0 %964  ;;  %v1217_v36 = vsub.s32 %v1214_v47, %v2627_v40  ;;  %vm1268_vm5 = vcmask 589312  }
 0x1f2   : > { %v989_v45 = vadd.f32 %v967_v27, %v925_v59  ;;  %v988_v25 = vadd.f32 %v965_v31, %v924_v15  ;;  %v1231_v15 = vsub.s32 %v1228_v50, %v2627_v40  ;;  %v1242_v27 = vadd.s32 4294967256, %v2428_v62 }
 0x1f3   : > { %v1133_v20 = vld [vmem:[#allocation2 + $0x28] sm:$0xff] }
 0x1f4   : > { %v1132_v46 = vld [vmem:[#allocation2 + $0x20] sm:$0xff]  ;;  %1006 = vst.msk [vmem:[#allocation2 + $0x48] sm:$0xff] %vm2618_vm6, %v989_v45  ;;  %v2447_v45 = vsub.s32 %v1235_v43, %v2627_v40  ;;  %vm1275_vm6 = vcmask 654912  }
 0x1f5   : > { %1005 = vst.msk [vmem:[#allocation2 + $0x40] sm:$0xff] %vm2619_vm7, %v988_v25  ;;  %1170 = vperm.xlu0 %1647, %v1131_v57   ;;  %1173 = vperm.xlu1 %1646, %v1132_v46   ;;  %v971_v63 = vpop.xlane.xlu1 %970  ;;  %v969_v33 = vpop.xlane.xlu0 %968  ;;  %v1249_v25 = vadd.s32 4294967248, %v2428_v62  ;;  %vm1282_vm7 = vcmask 720512  }
 0x1f6   : > { %v991_v51 = vadd.f32 %v971_v63, %v927_v28  ;;  %v990_v48 = vadd.f32 %v969_v33, %v926_v42  ;;  %v1245_v33 = vsub.s32 %v1242_v27, %v2627_v40 }
 0x1f7   : > { %v1135_v0 = vld [vmem:[#allocation2 + $0x38] sm:$0xff] }
 0x1f8   : > { %v1134_v9 = vld [vmem:[#allocation2 + $0x30] sm:$0xff]  ;;  %1008 = vst.msk [vmem:[#allocation2 + $0x58] sm:$0xff] %vm2620_vm9, %v991_v51  ;;  %v1256_v51 = vadd.s32 4294967240, %v2428_v62  ;;  %vm1289_vm9 = vcmask 786112  }
 0x1f9   : > { %1007 = vst.msk [vmem:[#allocation2 + $0x50] sm:$0xff] %vm2621_vm10, %v990_v48  ;;  %1176 = vperm.xlu0 %1647, %v1133_v20   ;;  %1179 = vperm.xlu1 %1646, %v1134_v9   ;;  %v975_v17 = vpop.xlane.xlu1 %974  ;;  %v973_v30 = vpop.xlane.xlu0 %972  ;;  %v2456_v20 = vsub.s32 %v1249_v25, %v2627_v40  ;;  %v1263_v9 = vadd.s32 4294967232, %v2428_v62  ;;  %vm1296_vm10 = vcmask 851712  }
 0x1fa   : > { %v993_v44 = vadd.f32 %v975_v17, %v929_v18  ;;  %v992_v53 = vadd.f32 %v973_v30, %v928_v54 }
 0x1fb   : > { %v1137_v6 = vld [vmem:[#allocation2 + $0x48] sm:$0xff] }
 0x1fc   : > { %v1136_v10 = vld [vmem:[#allocation2 + $0x40] sm:$0xff]  ;;  %1010 = vst.msk [vmem:[#allocation2 + $0x68] sm:$0xff] %vm2622_vm12, %v993_v44  ;;  %v1270_v44 = vadd.s32 4294967224, %v2428_v62  ;;  %vm1303_vm12 = vcmask 917312  }
 0x1fd   : > { %1009 = vst.msk [vmem:[#allocation2 + $0x60] sm:$0xff] %vm2623_vm13, %v992_v53  ;;  %1182 = vperm.xlu0 %1647, %v1135_v0   ;;  %1185 = vperm.xlu1 %1646, %v1136_v10   ;;  %v979_v39 = vpop.xlane.xlu1 %978  ;;  %v977_v13 = vpop.xlane.xlu0 %976  ;;  %v1277_v53 = vadd.s32 4294967216, %v2428_v62  ;;  %v1259_v10 = vsub.s32 %v1256_v51, %v2627_v40  ;;  %vm1310_vm13 = vcmask 982912  }
 0x1fe   : > { %v995_v60 = vadd.f32 %v979_v39, %v931_v4  ;;  %v994_v2 = vadd.f32 %v977_v13, %v930_v41 }
 0x1ff   : > { %v1139_v16 = vld [vmem:[#allocation2 + $0x58] sm:$0xff] }
 0x200   : > { %v1138_v21 = vld [vmem:[#allocation2 + $0x50] sm:$0xff]  ;;  %1012 = vst.msk [vmem:[#allocation2 + $0x78] sm:$0xff] %vm2624_vm14, %v995_v60  ;;  %v2468_v60 = vsub.s32 %v1263_v9, %v2627_v40  ;;  %vm1317_vm14 = vcmask 1048512  }
 0x201   : > { %1011 = vst.msk [vmem:[#allocation2 + $0x70] sm:$0xff] %vm2625_vm4, %v994_v2  ;;  %1188 = vperm.xlu0 %1647, %v1137_v6   ;;  %1191 = vperm.xlu1 %1646, %v1138_v21  }
 0x203   : > { %v1141_v32 = vld [vmem:[#allocation2 + $0x68] sm:$0xff] }
 0x204   : > { %v1140_v3 = vld [vmem:[#allocation2 + $0x60] sm:$0xff] }
 0x205   : > { %1194 = vperm.xlu0 %1647, %v1139_v16   ;;  %1197 = vperm.xlu1 %1646, %v1140_v3  }
 0x207   : > { %v1143_v34 = vld [vmem:[#allocation2 + $0x78] sm:$0xff] }
 0x208   : > { %v1142_v1 = vld [vmem:[#allocation2 + $0x70] sm:$0xff] }
 0x209   : > { %1399 = vperm.xlu0 %1647, %v1336_v35   ;;  %1200 = vperm.xlu1 %1646, %v1141_v32   ;;  %v1273_v35 = vsub.s32 %v1270_v44, %v2627_v40  ;;  %v2473_v32 = vsub.s32 %v1277_v53, %v2627_v40 }
 0x20d   : > { %1203 = vperm.xlu1 %1646, %v1142_v1  }
 0x211   : > { %1206 = vperm.xlu1 %1646, %v1143_v34  }
 0x247   : > { %v1358_v61 = vpop.permute.xlu0 %1357 }
 0x248   : > { %v1408_v46 = vrot.slane %v1358_v61, %v1217_v36  ;;  %v1284_v61 = vadd.s32 4294967208, %v2428_v62 }
 0x24b   : > { %v1355_v52 = vpop.permute.xlu1 %1354 }
 0x24c   : > { %v1404_v11 = vrot.slane %v1355_v52, %v1212_v14  ;;  %v1291_v52 = vadd.s32 4294967200, %v2428_v62 }
 0x24e   : > { %v1409_v42 = vsel %vm1219_vm0, %v1408_v46, %v1404_v11  ;;  %v1294_v43 = vsub.s32 %v1291_v52, %v2627_v40 }
 0x24f   : > { %v1364_v24 = vpop.permute.xlu0 %1363 }
 0x250   : > { %v1361_v26 = vpop.permute.xlu1 %1360  ;;  %v1418_v63 = vrot.slane %v1364_v24, %v1231_v15 }
 0x251   : > { %v1413_v31 = vrot.slane %v1361_v26, %v1224_v49 }
 0x253   : > { %v2413_v5 = vpop.permute.xlu0 %1369  ;;  %v1414_v48 = vsel %vm1226_vm1, %v1413_v31, %v1409_v42 }
 0x254   : > { %v1367_v55 = vpop.permute.xlu1 %1366  ;;  %v1419_v4 = vsel %vm1233_vm8, %v1418_v63, %v1414_v48  ;;  %v1428_v0 = vrot.slane %v2413_v5, %v1245_v33 }
 0x255   : > { %v1423_v18 = vrot.slane %v1367_v55, %v2447_v45 }
 0x257   : > { %v2415_v38 = vpop.permute.xlu0 %1375  ;;  %v1424_v39 = vsel %vm1240_vm11, %v1423_v18, %v1419_v4 }
 0x258   : > { %v2417_v29 = vpop.permute.xlu1 %1372  ;;  %v1429_v1 = vsel %vm1247_vm15, %v1428_v0, %v1424_v39  ;;  %v1438_v34 = vrot.slane %v2415_v38, %v1259_v10 }
 0x259   : > { %v1433_v13 = vrot.slane %v2417_v29, %v2456_v20 }
 0x25b   : > { %v2419_v19 = vpop.permute.xlu0 %1381  ;;  %v1434_v26 = vsel %vm1254_vm3, %v1433_v13, %v1429_v1 }
 0x25c   : > { %v2423_v23 = vpop.permute.xlu1 %1378  ;;  %v1439_v50 = vsel %vm1261_vm2, %v1438_v34, %v1434_v26 }
 0x25d   : > { %v1443_v24 = vrot.slane %v2423_v23, %v2468_v60  ;;  %v1448_v23 = vrot.slane %v2419_v19, %v1273_v35 }
 0x25f   : > { %v2421_v56 = vpop.permute.xlu0 %1387 }
 0x260   : > { %v2431_v8 = vpop.permute.xlu1 %1384 }
 0x264   : > { %v2425_v58 = vpop.permute.xlu0 %1390 }
 0x265   : > { %v1463_v63 = vrot.slane %v2425_v58, %v1294_v43 }
 0x268   : > { %v2433_v37 = vpop.permute.xlu0 %1393 }
 0x26c   : > { %v1165_v12 = vpop.permute.xlu1 %1164  ;;  %v2441_v59 = vpop.permute.xlu0 %1396 }
 0x26d   : > { %v1218_v41 = vrot.slane %v1165_v12, %v1217_v36  ;;  %v1444_v12 = vsel %vm1268_vm5, %v1443_v24, %v1439_v50  ;;  %v1453_v36 = vrot.slane %v2431_v8, %v2473_v32 }
 0x26e   : > { %v1449_v46 = vsel %vm1275_vm6, %v1448_v23, %v1444_v12 }
 0x26f   : > { %v1454_v42 = vsel %vm1282_vm7, %v1453_v36, %v1449_v46 }
 0x270   : > { %v1168_v28 = vpop.permute.xlu1 %1167  ;;  %v1162_v57 = vpop.permute.xlu0 %1161 }
 0x271   : > { %v1213_v30 = vrot.slane %v1162_v57, %v1212_v14  ;;  %v1225_v2 = vrot.slane %v1168_v28, %v1224_v49  ;;  %v1305_v14 = vadd.s32 4294967184, %v2428_v62  ;;  %v1287_v49 = vsub.s32 %v1284_v61, %v2627_v40 }
 0x272   : > { %v1312_v28 = vadd.s32 4294967176, %v2428_v62 }
 0x273   : > { %v1220_v16 = vsel %vm1219_vm0, %v1218_v41, %v1213_v30  ;;  %v1308_v57 = vsub.s32 %v1305_v14, %v2627_v40  ;;  %v1458_v8 = vrot.slane %v2421_v56, %v1287_v49 }
 0x274   : > { %v1174_v54 = vpop.permute.xlu1 %1173  ;;  %v1171_v17 = vpop.permute.xlu0 %1170  ;;  %v1227_v55 = vsel %vm1226_vm1, %v1225_v2, %v1220_v16 }
 0x275   : > { %v1232_v3 = vrot.slane %v1171_v17, %v1231_v15  ;;  %v1239_v5 = vrot.slane %v1174_v54, %v2447_v45  ;;  %v1301_v45 = vsub.s32 %v1298_v22, %v2627_v40  ;;  %v1315_v54 = vsub.s32 %v1312_v28, %v2627_v40 }
 0x276   : > { %v1473_v56 = vrot.slane %v2441_v59, %v1308_v57  ;;  %v1459_v17 = vsel %vm1289_vm9, %v1458_v8, %v1454_v42 }
 0x277   : > { %v1234_v38 = vsel %vm1233_vm8, %v1232_v3, %v1227_v55  ;;  %v1468_v62 = vrot.slane %v2433_v37, %v1301_v45  ;;  %v1464_v58 = vsel %vm1296_vm10, %v1463_v63, %v1459_v17 }
 0x278   : > { %v1180_v6 = vpop.permute.xlu1 %1179  ;;  %v1177_v21 = vpop.permute.xlu0 %1176  ;;  %v1241_v15 = vsel %vm1240_vm11, %v1239_v5, %v1234_v38 }
 0x279   : > { %v1246_v47 = vrot.slane %v1177_v21, %v1245_v33  ;;  %v1253_v11 = vrot.slane %v1180_v6, %v2456_v20  ;;  %v1469_v4 = vsel %vm1303_vm12, %v1468_v62, %v1464_v58 }
 0x27b   : > { %v1248_v25 = vsel %vm1247_vm15, %v1246_v47, %v1241_v15 }
 0x27c   : > { %v1186_v29 = vpop.permute.xlu1 %1185  ;;  %v1183_v7 = vpop.permute.xlu0 %1182  ;;  %v1255_v51 = vsel %vm1254_vm3, %v1253_v11, %v1248_v25 }
 0x27d   : > { %v1260_v19 = vrot.slane %v1183_v7, %v1259_v10  ;;  %v1267_v33 = vrot.slane %v1186_v29, %v2468_v60  ;;  %v1474_v10 = vsel %vm1310_vm13, %v1473_v56, %v1469_v4 }
 0x27f   : > { %v1262_v20 = vsel %vm1261_vm2, %v1260_v19, %v1255_v51 }
 0x280   : > { %v1192_v27 = vpop.permute.xlu1 %1191  ;;  %v1189_v31 = vpop.permute.xlu0 %1188  ;;  %v1269_v44 = vsel %vm1268_vm5, %v1267_v33, %v1262_v20 }
 0x281   : > { %v1274_v9 = vrot.slane %v1189_v31, %v1273_v35  ;;  %v1281_v30 = vrot.slane %v1192_v27, %v2473_v32 }
 0x283   : > { %v1276_v0 = vsel %vm1275_vm6, %v1274_v9, %v1269_v44 }
 0x284   : > { %v1198_v48 = vpop.permute.xlu1 %1197  ;;  %v1195_v18 = vpop.permute.xlu0 %1194  ;;  %v1283_v13 = vsel %vm1282_vm7, %v1281_v30, %v1276_v0 }
 0x285   : > { %v1288_v40 = vrot.slane %v1195_v18, %v1287_v49  ;;  %v1295_v39 = vrot.slane %v1198_v48, %v1294_v43 }
 0x287   : > { %v1290_v2 = vsel %vm1289_vm9, %v1288_v40, %v1283_v13 }
 0x288   : > { %v1201_v53 = vpop.permute.xlu1 %1200  ;;  %v1400_v37 = vpop.permute.xlu0 %1399  ;;  %v1297_v16 = vsel %vm1296_vm10, %v1295_v39, %v1290_v2 }
 0x289   : > { %v1478_v59 = vrot.slane %v1400_v37, %v1315_v54  ;;  %v1302_v6 = vrot.slane %v1201_v53, %v1301_v45 }
 0x28b   : > { %v1479_v41 = vsel %vm1317_vm14, %v1478_v59, %v1474_v10  ;;  %v1304_v35 = vsel %vm1303_vm12, %v1302_v6, %v1297_v16 }
 0x28c   : > { %1481 = vst [vmem:[%s218_s24] sm:$0x1] %v1479_v41  ;;  %v1204_v60 = vpop.permute.xlu1 %1203 }
 0x28d   : > { %v1309_v21 = vrot.slane %v1204_v60, %v1308_v57 }
 0x28f   : > { %v1311_v1 = vsel %vm1310_vm13, %v1309_v21, %v1304_v35 }
 0x290   : > { %v1207_v3 = vpop.permute.xlu1 %1206 }
 0x291   : > { %v1316_v32 = vrot.slane %v1207_v3, %v1315_v54 }
 0x293   : > { %v1318_v34 = vsel %vm1317_vm14, %v1316_v32, %v1311_v1 }
 0x294   : > { %1320 = vst [vmem:[%s212_s27] sm:$0x1] %v1318_v34 }
 0x295 PF: > { %s14_s14 = sadd.s32 1, %s1734_s14   ;;  %s2628_s12 = smov %s1730_s13 }
 0x296   : > { %p11_p5 = scmp.ge.s32.totalorder %s14_s14, 4   ;;  %s2629_s13 = smov %s2631_s15 }
 0x298   :  { %13 = sbr.rel (!%p11_p5) target bundleno = 2 (0x2), region = 85 }

</bundles_post_ra>
